<compile_context>
chip_gen: v7x
topology: tpu7x:2x2x1
jax: 0.10.0
libtpu: 0.0.40
codegen_flags: <defaults>
</compile_context>

<pallas_src>
import functools

import jax
import jax.numpy as jnp
from jax.experimental import pallas as pl
from jax.experimental.pallas import tpu as pltpu

EPS = 1e-5
_INV_SQRT2 = 0.7071067811865476
_SQRT_2_OVER_PI = 0.7978845608028654
_LANE = 128
_SUBLANE = 8


def _round_up(n, m):
    return ((n + m - 1) // m) * m


# ----------------------------------------------------------------------------- kernel
def gmlp_kernel(x_ref, w1_ref, b1_ref, wa_ref, ba_ref, wb_ref, bb_ref,
                w2_ref, b2_ref, o_ref, *, approx_gelu):
    x = x_ref[...].astype(jnp.float32)          # (tb, F_in)  -- unpadded feature dim
    mm_dtype = w1_ref.dtype                      # bf16 or f32 MXU operands

    # channel_proj1 (pre-norm BatchNorm folded into w1/b1) + GELU.
    h = jnp.dot(x.astype(mm_dtype), w1_ref[...],
                preferred_element_type=jnp.float32) + b1_ref[...]
    if approx_gelu:
        # tanh approximation -> EUP slot (keeps the VALU free); <~1e-3 from erf GELU.
        h = 0.5 * h * (1.0 + jnp.tanh(_SQRT_2_OVER_PI * (h + 0.044715 * h * h * h)))
    else:
        h = 0.5 * h * (1.0 + jax.lax.erf(h * _INV_SQRT2))   # exact (matches F.gelu)

    # SpatialGatingUnit: two H x H dots (BN folded into Wa/Wb, ba/bb).
    #   s = u * (v @ Wa + ba) + v * (u @ Wb + bb)
    h_pad = wa_ref.shape[0]
    u = h[:, :h_pad]                             # lane-aligned halves (h_pad % 128 == 0)
    v = h[:, h_pad:]
    ga = jnp.dot(v.astype(mm_dtype), wa_ref[...],
                 preferred_element_type=jnp.float32) + ba_ref[...]
    gb = jnp.dot(u.astype(mm_dtype), wb_ref[...],
                 preferred_element_type=jnp.float32) + bb_ref[...]
    s = u * ga + v * gb

    # channel_proj2 + residual.  Output slab is lane-padded (lane-dense stores);
    # the residual is lane-padded in-VMEM, padded cols are zero and sliced off by caller.
    y = jnp.dot(s.astype(mm_dtype), w2_ref[...],
                preferred_element_type=jnp.float32) + b2_ref[...]
    f_in = x.shape[-1]
    f_pad = y.shape[-1]
    if f_pad > f_in:
        x = jnp.concatenate(
            [x, jnp.zeros((x.shape[0], f_pad - f_in), jnp.float32)], axis=-1)
    o_ref[...] = (y + x).astype(o_ref.dtype)


# ----------------------------------------------------------------------------- folding
def fold_gmlp_params(p, *, matmul_dtype=jnp.bfloat16):
    """Fold the three inference BatchNorms into the Linear weights and lane-pad.

    Called ONCE at load time (params are static in inference); the per-call path
    only dispatches the pallas_call.
    """
    in_feats = p["w1"].shape[0]
    hid = p["ws"].shape[0]
    f_pad = _round_up(in_feats, _LANE)
    h_pad = _round_up(hid, _LANE)

    def bn_fold(g, b, m, v):
        s = g * jax.lax.rsqrt(v + EPS)
        return s, b - m * s

    s0, t0 = bn_fold(p["g0"], p["b0"], p["m0"], p["v0"])
    s1, t1 = bn_fold(p["g1"], p["be1"], p["m1"], p["va1"])
    s2, t2 = bn_fold(p["g2"], p["be2"], p["m2"], p["va2"])

    # Pre-norm folded into channel_proj1:  (x*s0 + t0) @ W1 + b1.
    w1 = p["w1"] * s0[0][:, None]                     # (F, 2*hid)
    b1 = p["bb1"] + t0 @ p["w1"]                      # (1, 2*hid)

    # sgu.norm_1 / norm_2 folded into two copies of spatial_proj.
    wa = p["ws"] * s1[0][:, None]                     # applied to v
    ba = p["bs"] + t1 @ p["ws"]
    wb = p["ws"] * s2[0][:, None]                     # applied to u
    bb = p["bs"] + t2 @ p["ws"]

    # Lane-pad; u-columns live in [0, h_pad), v-columns in [h_pad, 2*h_pad).
    # Input (K) dim of w1 stays UNPADDED (= in_feats) since x is passed unpadded.
    w1p = jnp.zeros((in_feats, 2 * h_pad), jnp.float32)
    w1p = w1p.at[:, :hid].set(w1[:, :hid])
    w1p = w1p.at[:, h_pad:h_pad + hid].set(w1[:, hid:])
    b1p = jnp.zeros((1, 2 * h_pad), jnp.float32)
    b1p = b1p.at[:, :hid].set(b1[:, :hid]).at[:, h_pad:h_pad + hid].set(b1[:, hid:])

    wap = jnp.zeros((h_pad, h_pad), jnp.float32).at[:hid, :hid].set(wa)
    bap = jnp.zeros((1, h_pad), jnp.float32).at[:, :hid].set(ba)
    wbp = jnp.zeros((h_pad, h_pad), jnp.float32).at[:hid, :hid].set(wb)
    bbp = jnp.zeros((1, h_pad), jnp.float32).at[:, :hid].set(bb)

    w2p = jnp.zeros((h_pad, f_pad), jnp.float32).at[:hid, :in_feats].set(p["w2"])
    b2p = jnp.zeros((1, f_pad), jnp.float32).at[:, :in_feats].set(p["bb2"])

    cast = lambda a: a.astype(matmul_dtype)           # MXU operands only; biases stay f32
    return dict(
        w1=cast(w1p), b1=b1p, wa=cast(wap), ba=bap, wb=cast(wbp), bb=bbp,
        w2=cast(w2p), b2=b2p,
        in_feats=in_feats, hid=hid, f_pad=f_pad, h_pad=h_pad,
    )


# ----------------------------------------------------------------------------- wrapper
def gmlp_block(x, folded, *, tb=256, approx_gelu=True):
    """x: [B, in_feats] float32.  folded: output of fold_gmlp_params (call once)."""
    B, F_in = x.shape
    assert F_in == folded["in_feats"], "feature dim mismatch with folded params"
    f_pad, h_pad = folded["f_pad"], folded["h_pad"]

    # Batch tile: sublane-aligned, and keep >= 2 grid steps when possible so the
    # "parallel" axis can shard across v7x's two TensorCores and still pipeline.
    tb = max(_SUBLANE, min(_round_up(tb, _SUBLANE),
                           _round_up(max(B // 2, _SUBLANE), _SUBLANE)))
    b_pad = _round_up(B, tb)
    # Ragged batches: pad rows with zeros (padded rows' outputs are sliced off).
    xb = x if b_pad == B else jnp.pad(x, ((0, b_pad - B), (0, 0)))

    weights = (folded["w1"], folded["b1"], folded["wa"], folded["ba"],
               folded["wb"], folded["bb"], folded["w2"], folded["b2"])
    wbytes = sum(int(w.size) * w.dtype.itemsize for w in weights)

    # VMEM budget from actual buffer sizes: weights (x buffer count), double-buffered
    # x/out tiles, ~6 f32 (tb, 2*h_pad) intermediates, plus slack.
    def vmem_budget(weight_bufs):
        need = (weight_bufs * wbytes
                + 2 * tb * F_in * 4 + 2 * tb * f_pad * 4
                + 6 * tb * 2 * h_pad * 4
                + (4 << 20))
        return int(min(max(need, 16 << 20), 100 << 20))

    flops = 2 * b_pad * (F_in * 2 * h_pad + 2 * h_pad * h_pad + h_pad * f_pad)
    cost = pl.CostEstimate(
        flops=flops,
        transcendentals=b_pad * 2 * h_pad,
        bytes_accessed=int(xb.size) * 4 + b_pad * f_pad * 4 + wbytes,
    )

    def run(resident_weights):
        # Grid-invariant weights/biases: single-buffer them (Buffered(1)) instead of
        # the default double-buffering -- halves resident weight VMEM on v7x.
        mode = dict(pipeline_mode=pl.Buffered(1)) if resident_weights else {}
        full = lambda r, c: pl.BlockSpec((r, c), lambda i: (0, 0), **mode)
        in_specs = [pl.BlockSpec((tb, F_in), lambda i: (i, 0))]    # x tile, unpadded lanes
        in_specs += [full(*w.shape) for w in weights]
        return pl.pallas_call(
            functools.partial(gmlp_kernel, approx_gelu=approx_gelu),
            out_shape=jax.ShapeDtypeStruct((b_pad, f_pad), x.dtype),
            grid=(b_pad // tb,),
            in_specs=in_specs,
            out_specs=pl.BlockSpec((tb, f_pad), lambda i: (i, 0)),
            compiler_params=pltpu.CompilerParams(
                dimension_semantics=("parallel",),
                vmem_limit_bytes=vmem_budget(1 if resident_weights else 2),
            ),
            cost_estimate=cost,
        )(xb, *weights)

    try:
        out = run(True)
    except Exception:                         # pragma: no cover - jax w/o Buffered(1)
        out = run(False)
    return out[:B, :F_in]


# ----------------------------------------------------------------------------- reference
def _reference(x, p):
    """Plain-JAX reference of the same forward pass (unfolded params, exact GELU)."""
    def bn(t, g, b, m, v):
        return (t - m) * jax.lax.rsqrt(v + EPS) * g + b

    residual = x
    xn = bn(x, p["g0"], p["b0"], p["m0"], p["v0"])
    h = xn @ p["w1"] + p["bb1"]
    h = 0.5 * h * (1.0 + jax.lax.erf(h * _INV_SQRT2))
    hid = p["ws"].shape[0]
    u, v = h[:, :hid], h[:, hid:]
    a = bn(v, p["g1"], p["be1"], p["m1"], p["va1"]) @ p["ws"] + p["bs"]
    b = bn(u, p["g2"], p["be2"], p["m2"], p["va2"]) @ p["ws"] + p["bs"]
    s = u * a + v * b
    return s @ p["w2"] + p["bb2"] + residual


def init_params(key, in_feats, hid_feats):
    ks = jax.random.split(key, 16)

    def bn_params(k, f):
        k1, k2, k3, k4 = jax.random.split(k, 4)
        return (
            jax.random.normal(k1, (1, f), jnp.float32) * 0.1 + 1.0,   # gamma
            jax.random.normal(k2, (1, f), jnp.float32) * 0.1,         # beta
            jax.random.normal(k3, (1, f), jnp.float32) * 0.1,         # running_mean
            jax.random.uniform(k4, (1, f), jnp.float32, 0.5, 1.5),    # running_var
        )

    g0, b0, m0, v0 = bn_params(ks[0], in_feats)
    g1, be1, m1, va1 = bn_params(ks[1], hid_feats)
    g2, be2, m2, va2 = bn_params(ks[2], hid_feats)

    def linear(kw, kb, fin, fout):
        scale = 1.0 / jnp.sqrt(jnp.float32(fin))
        w = jax.random.uniform(kw, (fin, fout), jnp.float32, -scale, scale)  # [in, out]
        b = jax.random.uniform(kb, (1, fout), jnp.float32, -scale, scale)
        return w, b

    w1, bb1 = linear(ks[3], ks[4], in_feats, 2 * hid_feats)    # channel_proj1
    ws, bs = linear(ks[5], ks[6], hid_feats, hid_feats)        # spatial_proj
    w2, bb2 = linear(ks[7], ks[8], hid_feats, in_feats)        # channel_proj2

    return dict(
        g0=g0, b0=b0, m0=m0, v0=v0,
        w1=w1, bb1=bb1,
        g1=g1, be1=be1, m1=m1, va1=va1,
        g2=g2, be2=be2, m2=m2, va2=va2,
        ws=ws, bs=bs,
        w2=w2, bb2=bb2,
    )


if __name__ == "__main__":
    # Small module sizes (in_feats=32, hid=16); batch 256 exercises a 2-step
    # parallel grid (tb is clamped to 128 so both v7x TensorCores get work).
    B, IN_FEATS, HID_FEATS = 256, 32, 16
    key = jax.random.PRNGKey(0)
    kx, kp = jax.random.split(key)

    x = jax.random.normal(kx, (B, IN_FEATS), jnp.float32)
    params = init_params(kp, IN_FEATS, HID_FEATS)
    ref = _reference(x, params)

    # 1) Verification path: f32 MXU operands + exact erf GELU, bit-faithful check.
    folded_f32 = fold_gmlp_params(params, matmul_dtype=jnp.float32)
    out_exact = jax.block_until_ready(
        gmlp_block(x, folded_f32, tb=256, approx_gelu=False))
    assert out_exact.shape == (B, IN_FEATS)
    err_exact = float(jnp.max(jnp.abs(out_exact - ref)))
    assert jnp.allclose(out_exact, ref, atol=1e-4, rtol=1e-4), \
        f"exact-path mismatch vs reference ({err_exact})"

    # 2) Production path: bf16 MXU operands + tanh GELU (f32 accumulation/elementwise).
    folded_bf16 = fold_gmlp_params(params, matmul_dtype=jnp.bfloat16)
    out_fast = jax.block_until_ready(
        gmlp_block(x, folded_bf16, tb=256, approx_gelu=True))
    assert out_fast.shape == (B, IN_FEATS)
    err_fast = float(jnp.max(jnp.abs(out_fast - ref)))
    assert err_fast < 0.15, f"bf16/tanh fast path too far from reference ({err_fast})"

    print("KERNEL_OK")
</pallas_src>

<mosaic_0001>
module attributes {stable_mosaic.version = 11 : i64} {
  func.func @gmlp_kernel(%arg0: i32, %arg1: memref<128x32xf32, #tpu.memory_space<vmem>>, %arg2: memref<32x256xf32, #tpu.memory_space<vmem>>, %arg3: memref<1x256xf32, #tpu.memory_space<vmem>>, %arg4: memref<128x128xf32, #tpu.memory_space<vmem>>, %arg5: memref<1x128xf32, #tpu.memory_space<vmem>>, %arg6: memref<128x128xf32, #tpu.memory_space<vmem>>, %arg7: memref<1x128xf32, #tpu.memory_space<vmem>>, %arg8: memref<128x128xf32, #tpu.memory_space<vmem>>, %arg9: memref<1x128xf32, #tpu.memory_space<vmem>>, %arg10: memref<128x128xf32, #tpu.memory_space<vmem>>) attributes {dimension_semantics = [#tpu.dimension_semantics<parallel>], iteration_bounds = array<i64: 2>, scalar_prefetch = 0 : i64, scratch_operands = 0 : i64, tpu.core_type = #tpu.core_type<tc>, window_params = [{transform_indices = @transform_0, window_bounds = array<i64: 128, 32>}, {pipeline_mode = #tpu.pipeline_mode<synchronous>, transform_indices = @transform_1, window_bounds = array<i64: 32, 256>}, {pipeline_mode = #tpu.pipeline_mode<synchronous>, transform_indices = @transform_2, window_bounds = array<i64: 1, 256>}, {pipeline_mode = #tpu.pipeline_mode<synchronous>, transform_indices = @transform_3, window_bounds = array<i64: 128, 128>}, {pipeline_mode = #tpu.pipeline_mode<synchronous>, transform_indices = @transform_4, window_bounds = array<i64: 1, 128>}, {pipeline_mode = #tpu.pipeline_mode<synchronous>, transform_indices = @transform_5, window_bounds = array<i64: 128, 128>}, {pipeline_mode = #tpu.pipeline_mode<synchronous>, transform_indices = @transform_6, window_bounds = array<i64: 1, 128>}, {pipeline_mode = #tpu.pipeline_mode<synchronous>, transform_indices = @transform_7, window_bounds = array<i64: 128, 128>}, {pipeline_mode = #tpu.pipeline_mode<synchronous>, transform_indices = @transform_8, window_bounds = array<i64: 1, 128>}, {transform_indices = @transform_9, window_bounds = array<i64: 128, 128>}]} {
    %c0 = arith.constant 0 : index
    %c0_0 = arith.constant 0 : index
    %0 = vector.load %arg1[%c0, %c0_0] : memref<128x32xf32, #tpu.memory_space<vmem>>, vector<128x32xf32>
    %c0_1 = arith.constant 0 : index
    %c0_2 = arith.constant 0 : index
    %1 = vector.load %arg2[%c0_1, %c0_2] : memref<32x256xf32, #tpu.memory_space<vmem>>, vector<32x256xf32>
    %cst = arith.constant dense<0.000000e+00> : vector<128x256xf32>
    %2 = tpu.matmul %0, %1, %cst {dimension_numbers = #tpu.dot_dimension_numbers<[1], [0], [0], [1], [0, 0, 1, 1], [], []>} : vector<128x32xf32>, vector<32x256xf32>, vector<128x256xf32> -> vector<128x256xf32>
    %c0_3 = arith.constant 0 : index
    %c0_4 = arith.constant 0 : index
    %3 = vector.load %arg3[%c0_3, %c0_4] : memref<1x256xf32, #tpu.memory_space<vmem>>, vector<1x256xf32>
    %4 = vector.broadcast %3 : vector<1x256xf32> to vector<128x256xf32>
    %5 = arith.addf %2, %4 : vector<128x256xf32>
    %cst_5 = arith.constant 5.000000e-01 : f32
    %6 = vector.broadcast %cst_5 : f32 to vector<128x256xf32>
    %7 = arith.mulf %6, %5 : vector<128x256xf32>
    %cst_6 = arith.constant 0.707106769 : f32
    %8 = vector.broadcast %cst_6 : f32 to vector<128x256xf32>
    %9 = arith.mulf %5, %8 : vector<128x256xf32>
    %10 = math.erf %9 : vector<128x256xf32>
    %cst_7 = arith.constant 1.000000e+00 : f32
    %11 = vector.broadcast %cst_7 : f32 to vector<128x256xf32>
    %12 = arith.addf %11, %10 : vector<128x256xf32>
    %13 = arith.mulf %7, %12 : vector<128x256xf32>
    %14 = vector.extract_strided_slice %13 {offsets = [0, 0], sizes = [128, 128], strides = [1, 1]} : vector<128x256xf32> to vector<128x128xf32>
    %15 = vector.extract_strided_slice %13 {offsets = [0, 128], sizes = [128, 128], strides = [1, 1]} : vector<128x256xf32> to vector<128x128xf32>
    %c0_8 = arith.constant 0 : index
    %c0_9 = arith.constant 0 : index
    %16 = vector.load %arg4[%c0_8, %c0_9] : memref<128x128xf32, #tpu.memory_space<vmem>>, vector<128x128xf32>
    %cst_10 = arith.constant dense<0.000000e+00> : vector<128x128xf32>
    %17 = tpu.matmul %15, %16, %cst_10 {dimension_numbers = #tpu.dot_dimension_numbers<[1], [0], [0], [1], [0, 0, 1, 1], [], []>} : vector<128x128xf32>, vector<128x128xf32>, vector<128x128xf32> -> vector<128x128xf32>
    %c0_11 = arith.constant 0 : index
    %c0_12 = arith.constant 0 : index
    %18 = vector.load %arg5[%c0_11, %c0_12] : memref<1x128xf32, #tpu.memory_space<vmem>>, vector<1x128xf32>
    %19 = vector.broadcast %18 : vector<1x128xf32> to vector<128x128xf32>
    %20 = arith.addf %17, %19 : vector<128x128xf32>
    %c0_13 = arith.constant 0 : index
    %c0_14 = arith.constant 0 : index
    %21 = vector.load %arg6[%c0_13, %c0_14] : memref<128x128xf32, #tpu.memory_space<vmem>>, vector<128x128xf32>
    %cst_15 = arith.constant dense<0.000000e+00> : vector<128x128xf32>
    %22 = tpu.matmul %14, %21, %cst_15 {dimension_numbers = #tpu.dot_dimension_numbers<[1], [0], [0], [1], [0, 0, 1, 1], [], []>} : vector<128x128xf32>, vector<128x128xf32>, vector<128x128xf32> -> vector<128x128xf32>
    %c0_16 = arith.constant 0 : index
    %c0_17 = arith.constant 0 : index
    %23 = vector.load %arg7[%c0_16, %c0_17] : memref<1x128xf32, #tpu.memory_space<vmem>>, vector<1x128xf32>
    %24 = vector.broadcast %23 : vector<1x128xf32> to vector<128x128xf32>
    %25 = arith.addf %22, %24 : vector<128x128xf32>
    %26 = arith.mulf %14, %20 : vector<128x128xf32>
    %27 = arith.mulf %15, %25 : vector<128x128xf32>
    %28 = arith.addf %26, %27 : vector<128x128xf32>
    %c0_18 = arith.constant 0 : index
    %c0_19 = arith.constant 0 : index
    %29 = vector.load %arg8[%c0_18, %c0_19] : memref<128x128xf32, #tpu.memory_space<vmem>>, vector<128x128xf32>
    %cst_20 = arith.constant dense<0.000000e+00> : vector<128x128xf32>
    %30 = tpu.matmul %28, %29, %cst_20 {dimension_numbers = #tpu.dot_dimension_numbers<[1], [0], [0], [1], [0, 0, 1, 1], [], []>} : vector<128x128xf32>, vector<128x128xf32>, vector<128x128xf32> -> vector<128x128xf32>
    %c0_21 = arith.constant 0 : index
    %c0_22 = arith.constant 0 : index
    %31 = vector.load %arg9[%c0_21, %c0_22] : memref<1x128xf32, #tpu.memory_space<vmem>>, vector<1x128xf32>
    %32 = vector.broadcast %31 : vector<1x128xf32> to vector<128x128xf32>
    %33 = arith.addf %30, %32 : vector<128x128xf32>
    %cst_23 = arith.constant 0.000000e+00 : f32
    %34 = vector.broadcast %cst_23 : f32 to vector<128x96xf32>
    %35 = tpu.concatenate %0, %34 in 1 : vector<128x32xf32>, vector<128x96xf32> -> vector<128x128xf32>
    %36 = arith.addf %33, %35 : vector<128x128xf32>
    %c0_24 = arith.constant 0 : index
    %c0_25 = arith.constant 0 : index
    %37 = vector.load %arg10[%c0_24, %c0_25] : memref<128x128xf32, #tpu.memory_space<vmem>>, vector<128x128xf32>
    tpu.vector_store %arg10[%c0_24, %c0_25], %36 {strides = array<i32>} : memref<128x128xf32, #tpu.memory_space<vmem>>, vector<128x128xf32>,
    return
  }
  func.func @transform_0(%arg0: i32) -> (i32, i32) {
    %c0_i32 = arith.constant 0 : i32
    %c0_i32_0 = arith.constant 0 : i32
    return %arg0, %c0_i32 : i32, i32
  }
  func.func @transform_1(%arg0: i32) -> (i32, i32) {
    %c0_i32 = arith.constant 0 : i32
    %c0_i32_0 = arith.constant 0 : i32
    %c0_i32_1 = arith.constant 0 : i32
    return %c0_i32, %c0_i32_0 : i32, i32
  }
  func.func @transform_2(%arg0: i32) -> (i32, i32) {
    %c0_i32 = arith.constant 0 : i32
    %c0_i32_0 = arith.constant 0 : i32
    %c0_i32_1 = arith.constant 0 : i32
    return %c0_i32, %c0_i32_0 : i32, i32
  }
  func.func @transform_3(%arg0: i32) -> (i32, i32) {
    %c0_i32 = arith.constant 0 : i32
    %c0_i32_0 = arith.constant 0 : i32
    %c0_i32_1 = arith.constant 0 : i32
    return %c0_i32, %c0_i32_0 : i32, i32
  }
  func.func @transform_4(%arg0: i32) -> (i32, i32) {
    %c0_i32 = arith.constant 0 : i32
    %c0_i32_0 = arith.constant 0 : i32
    %c0_i32_1 = arith.constant 0 : i32
    return %c0_i32, %c0_i32_0 : i32, i32
  }
  func.func @transform_5(%arg0: i32) -> (i32, i32) {
    %c0_i32 = arith.constant 0 : i32
    %c0_i32_0 = arith.constant 0 : i32
    %c0_i32_1 = arith.constant 0 : i32
    return %c0_i32, %c0_i32_0 : i32, i32
  }
  func.func @transform_6(%arg0: i32) -> (i32, i32) {
    %c0_i32 = arith.constant 0 : i32
    %c0_i32_0 = arith.constant 0 : i32
    %c0_i32_1 = arith.constant 0 : i32
    return %c0_i32, %c0_i32_0 : i32, i32
  }
  func.func @transform_7(%arg0: i32) -> (i32, i32) {
    %c0_i32 = arith.constant 0 : i32
    %c0_i32_0 = arith.constant 0 : i32
    %c0_i32_1 = arith.constant 0 : i32
    return %c0_i32, %c0_i32_0 : i32, i32
  }
  func.func @transform_8(%arg0: i32) -> (i32, i32) {
    %c0_i32 = arith.constant 0 : i32
    %c0_i32_0 = arith.constant 0 : i32
    %c0_i32_1 = arith.constant 0 : i32
    return %c0_i32, %c0_i32_0 : i32, i32
  }
  func.func @transform_9(%arg0: i32) -> (i32, i32) {
    %c0_i32 = arith.constant 0 : i32
    %c0_i32_0 = arith.constant 0 : i32
    return %arg0, %c0_i32 : i32, i32
  }
}

module attributes {stable_mosaic.version = 11 : i64} {
  func.func @gmlp_kernel(%arg0: i32, %arg1: memref<128x32xf32, #tpu.memory_space<vmem>>, %arg2: memref<32x256xf32, #tpu.memory_space<vmem>>, %arg3: memref<1x256xf32, #tpu.memory_space<vmem>>, %arg4: memref<128x128xf32, #tpu.memory_space<vmem>>, %arg5: memref<1x128xf32, #tpu.memory_space<vmem>>, %arg6: memref<128x128xf32, #tpu.memory_space<vmem>>, %arg7: memref<1x128xf32, #tpu.memory_space<vmem>>, %arg8: memref<128x128xf32, #tpu.memory_space<vmem>>, %arg9: memref<1x128xf32, #tpu.memory_space<vmem>>, %arg10: memref<128x128xf32, #tpu.memory_space<vmem>>) attributes {dimension_semantics = [#tpu.dimension_semantics<parallel>], iteration_bounds = array<i64: 2>, scalar_prefetch = 0 : i64, scratch_operands = 0 : i64, tpu.core_type = #tpu.core_type<tc>, window_params = [{transform_indices = @transform_0, window_bounds = array<i64: 128, 32>}, {pipeline_mode = #tpu.pipeline_mode<synchronous>, transform_indices = @transform_1, window_bounds = array<i64: 32, 256>}, {pipeline_mode = #tpu.pipeline_mode<synchronous>, transform_indices = @transform_2, window_bounds = array<i64: 1, 256>}, {pipeline_mode = #tpu.pipeline_mode<synchronous>, transform_indices = @transform_3, window_bounds = array<i64: 128, 128>}, {pipeline_mode = #tpu.pipeline_mode<synchronous>, transform_indices = @transform_4, window_bounds = array<i64: 1, 128>}, {pipeline_mode = #tpu.pipeline_mode<synchronous>, transform_indices = @transform_5, window_bounds = array<i64: 128, 128>}, {pipeline_mode = #tpu.pipeline_mode<synchronous>, transform_indices = @transform_6, window_bounds = array<i64: 1, 128>}, {pipeline_mode = #tpu.pipeline_mode<synchronous>, transform_indices = @transform_7, window_bounds = array<i64: 128, 128>}, {pipeline_mode = #tpu.pipeline_mode<synchronous>, transform_indices = @transform_8, window_bounds = array<i64: 1, 128>}, {transform_indices = @transform_9, window_bounds = array<i64: 128, 128>}]} {
    %c0 = arith.constant 0 : index
    %c0_0 = arith.constant 0 : index
    %0 = vector.load %arg1[%c0, %c0_0] : memref<128x32xf32, #tpu.memory_space<vmem>>, vector<128x32xf32>
    %c0_1 = arith.constant 0 : index
    %c0_2 = arith.constant 0 : index
    %1 = vector.load %arg2[%c0_1, %c0_2] : memref<32x256xf32, #tpu.memory_space<vmem>>, vector<32x256xf32>
    %cst = arith.constant dense<0.000000e+00> : vector<128x256xf32>
    %2 = tpu.matmul %0, %1, %cst {dimension_numbers = #tpu.dot_dimension_numbers<[1], [0], [0], [1], [0, 0, 1, 1], [], []>} : vector<128x32xf32>, vector<32x256xf32>, vector<128x256xf32> -> vector<128x256xf32>
    %c0_3 = arith.constant 0 : index
    %c0_4 = arith.constant 0 : index
    %3 = vector.load %arg3[%c0_3, %c0_4] : memref<1x256xf32, #tpu.memory_space<vmem>>, vector<1x256xf32>
    %4 = vector.broadcast %3 : vector<1x256xf32> to vector<128x256xf32>
    %5 = arith.addf %2, %4 : vector<128x256xf32>
    %cst_5 = arith.constant 5.000000e-01 : f32
    %6 = vector.broadcast %cst_5 : f32 to vector<128x256xf32>
    %7 = arith.mulf %6, %5 : vector<128x256xf32>
    %cst_6 = arith.constant 0.707106769 : f32
    %8 = vector.broadcast %cst_6 : f32 to vector<128x256xf32>
    %9 = arith.mulf %5, %8 : vector<128x256xf32>
    %10 = math.erf %9 : vector<128x256xf32>
    %cst_7 = arith.constant 1.000000e+00 : f32
    %11 = vector.broadcast %cst_7 : f32 to vector<128x256xf32>
    %12 = arith.addf %11, %10 : vector<128x256xf32>
    %13 = arith.mulf %7, %12 : vector<128x256xf32>
    %14 = vector.extract_strided_slice %13 {offsets = [0, 0], sizes = [128, 128], strides = [1, 1]} : vector<128x256xf32> to vector<128x128xf32>
    %15 = vector.extract_strided_slice %13 {offsets = [0, 128], sizes = [128, 128], strides = [1, 1]} : vector<128x256xf32> to vector<128x128xf32>
    %c0_8 = arith.constant 0 : index
    %c0_9 = arith.constant 0 : index
    %16 = vector.load %arg4[%c0_8, %c0_9] : memref<128x128xf32, #tpu.memory_space<vmem>>, vector<128x128xf32>
    %cst_10 = arith.constant dense<0.000000e+00> : vector<128x128xf32>
    %17 = tpu.matmul %15, %16, %cst_10 {dimension_numbers = #tpu.dot_dimension_numbers<[1], [0], [0], [1], [0, 0, 1, 1], [], []>} : vector<128x128xf32>, vector<128x128xf32>, vector<128x128xf32> -> vector<128x128xf32>
    %c0_11 = arith.constant 0 : index
    %c0_12 = arith.constant 0 : index
    %18 = vector.load %arg5[%c0_11, %c0_12] : memref<1x128xf32, #tpu.memory_space<vmem>>, vector<1x128xf32>
    %19 = vector.broadcast %18 : vector<1x128xf32> to vector<128x128xf32>
    %20 = arith.addf %17, %19 : vector<128x128xf32>
    %c0_13 = arith.constant 0 : index
    %c0_14 = arith.constant 0 : index
    %21 = vector.load %arg6[%c0_13, %c0_14] : memref<128x128xf32, #tpu.memory_space<vmem>>, vector<128x128xf32>
    %cst_15 = arith.constant dense<0.000000e+00> : vector<128x128xf32>
    %22 = tpu.matmul %14, %21, %cst_15 {dimension_numbers = #tpu.dot_dimension_numbers<[1], [0], [0], [1], [0, 0, 1, 1], [], []>} : vector<128x128xf32>, vector<128x128xf32>, vector<128x128xf32> -> vector<128x128xf32>
    %c0_16 = arith.constant 0 : index
    %c0_17 = arith.constant 0 : index
    %23 = vector.load %arg7[%c0_16, %c0_17] : memref<1x128xf32, #tpu.memory_space<vmem>>, vector<1x128xf32>
    %24 = vector.broadcast %23 : vector<1x128xf32> to vector<128x128xf32>
    %25 = arith.addf %22, %24 : vector<128x128xf32>
    %26 = arith.mulf %14, %20 : vector<128x128xf32>
    %27 = arith.mulf %15, %25 : vector<128x128xf32>
    %28 = arith.addf %26, %27 : vector<128x128xf32>
    %c0_18 = arith.constant 0 : index
    %c0_19 = arith.constant 0 : index
    %29 = vector.load %arg8[%c0_18, %c0_19] : memref<128x128xf32, #tpu.memory_space<vmem>>, vector<128x128xf32>
    %cst_20 = arith.constant dense<0.000000e+00> : vector<128x128xf32>
    %30 = tpu.matmul %28, %29, %cst_20 {dimension_numbers = #tpu.dot_dimension_numbers<[1], [0], [0], [1], [0, 0, 1, 1], [], []>} : vector<128x128xf32>, vector<128x128xf32>, vector<128x128xf32> -> vector<128x128xf32>
    %c0_21 = arith.constant 0 : index
    %c0_22 = arith.constant 0 : index
    %31 = vector.load %arg9[%c0_21, %c0_22] : memref<1x128xf32, #tpu.memory_space<vmem>>, vector<1x128xf32>
    %32 = vector.broadcast %31 : vector<1x128xf32> to vector<128x128xf32>
    %33 = arith.addf %30, %32 : vector<128x128xf32>
    %cst_23 = arith.constant 0.000000e+00 : f32
    %34 = vector.broadcast %cst_23 : f32 to vector<128x96xf32>
    %35 = tpu.concatenate %0, %34 in 1 : vector<128x32xf32>, vector<128x96xf32> -> vector<128x128xf32>
    %36 = arith.addf %33, %35 : vector<128x128xf32>
    %c0_24 = arith.constant 0 : index
    %c0_25 = arith.constant 0 : index
    %37 = vector.load %arg10[%c0_24, %c0_25] : memref<128x128xf32, #tpu.memory_space<vmem>>, vector<128x128xf32>
    tpu.vector_store %arg10[%c0_24, %c0_25], %36 {strides = array<i32>} : memref<128x128xf32, #tpu.memory_space<vmem>>, vector<128x128xf32>,
    return
  }
  func.func @transform_0(%arg0: i32) -> (i32, i32) {
    %c0_i32 = arith.constant 0 : i32
    %c0_i32_0 = arith.constant 0 : i32
    return %arg0, %c0_i32 : i32, i32
  }
  func.func @transform_1(%arg0: i32) -> (i32, i32) {
    %c0_i32 = arith.constant 0 : i32
    %c0_i32_0 = arith.constant 0 : i32
    %c0_i32_1 = arith.constant 0 : i32
    return %c0_i32, %c0_i32_0 : i32, i32
  }
  func.func @transform_2(%arg0: i32) -> (i32, i32) {
    %c0_i32 = arith.constant 0 : i32
    %c0_i32_0 = arith.constant 0 : i32
    %c0_i32_1 = arith.constant 0 : i32
    return %c0_i32, %c0_i32_0 : i32, i32
  }
  func.func @transform_3(%arg0: i32) -> (i32, i32) {
    %c0_i32 = arith.constant 0 : i32
    %c0_i32_0 = arith.constant 0 : i32
    %c0_i32_1 = arith.constant 0 : i32
    return %c0_i32, %c0_i32_0 : i32, i32
  }
  func.func @transform_4(%arg0: i32) -> (i32, i32) {
    %c0_i32 = arith.constant 0 : i32
    %c0_i32_0 = arith.constant 0 : i32
    %c0_i32_1 = arith.constant 0 : i32
    return %c0_i32, %c0_i32_0 : i32, i32
  }
  func.func @transform_5(%arg0: i32) -> (i32, i32) {
    %c0_i32 = arith.constant 0 : i32
    %c0_i32_0 = arith.constant 0 : i32
    %c0_i32_1 = arith.constant 0 : i32
    return %c0_i32, %c0_i32_0 : i32, i32
  }
  func.func @transform_6(%arg0: i32) -> (i32, i32) {
    %c0_i32 = arith.constant 0 : i32
    %c0_i32_0 = arith.constant 0 : i32
    %c0_i32_1 = arith.constant 0 : i32
    return %c0_i32, %c0_i32_0 : i32, i32
  }
  func.func @transform_7(%arg0: i32) -> (i32, i32) {
    %c0_i32 = arith.constant 0 : i32
    %c0_i32_0 = arith.constant 0 : i32
    %c0_i32_1 = arith.constant 0 : i32
    return %c0_i32, %c0_i32_0 : i32, i32
  }
  func.func @transform_8(%arg0: i32) -> (i32, i32) {
    %c0_i32 = arith.constant 0 : i32
    %c0_i32_0 = arith.constant 0 : i32
    %c0_i32_1 = arith.constant 0 : i32
    return %c0_i32, %c0_i32_0 : i32, i32
  }
  func.func @transform_9(%arg0: i32) -> (i32, i32) {
    %c0_i32 = arith.constant 0 : i32
    %c0_i32_0 = arith.constant 0 : i32
    return %arg0, %c0_i32 : i32, i32
  }
}

</mosaic_0001>

<bundles_post_ra>
// kernel: tpu_custom_call.1
= control target key start
LH: loop header
LB: loop body
LE: loop exit
PB: predicated region body
PF: predicated region fallthrough
CT: control target
= control target key end

     0   :  { %14 = vsyncpa [#allocation3], 0  ;;  %s2875_s0 = inlined_call_operand.vmem [shape: f32[256,32], index: 0, kind: input, shape index: {}]   ;;  %s2876_s1 = inlined_call_operand.vmem [shape: f32[32,256], index: 1, kind: input, shape index: {}]   ;;  %s2877_s2 = inlined_call_operand.vmem [shape: f32[1,256], index: 2, kind: input, shape index: {}]   ;;  %s2878_s3 = inlined_call_operand.vmem [shape: f32[128,128], index: 3, kind: input, shape index: {}]   ;;  %s2879_s4 = inlined_call_operand.vmem [shape: f32[1,128], index: 4, kind: input, shape index: {}]   ;;  %s2880_s5 = inlined_call_operand.vmem [shape: f32[128,128], index: 5, kind: input, shape index: {}]   ;;  %s2881_s6 = inlined_call_operand.vmem [shape: f32[1,128], index: 6, kind: input, shape index: {}]   ;;  %s2882_s7 = inlined_call_operand.hbm [shape: f32[128,128], index: 7, kind: input, shape index: {}]   ;;  %s2883_s8 = inlined_call_operand.vmem [shape: f32[1,128], index: 8, kind: input, shape index: {}]   ;;  %s2884_s9 = inlined_call_operand.hbm [shape: f32[256,128], index: 9, kind: output, shape index: {}]  }
   0x1   :  { %15 = vsyncpa [#allocation4], 0 }
   0x2   :  { %17 = vsyncpa [#allocation4 + $0x1], 0  ;;  %s2149_s30 = smov 0   ;;  %s2151_s10 = smov 0  }
   0x3   :  { %s2153_s11 = smov 0   ;;  %s2155_s12 = smov 0  }
   0x4 LB: > { %s2170_s13 = sadd.s32 4294967295, %s2090_s12   ;;  %s1443_s14 = sadd.s32 4294967294, %s2090_s12   ;;  %s2090_s12 = sphi %s2155_s12, %s2900_s12   ;;  %s2086_s11 = sphi %s2153_s11, %s2899_s11   ;;  %s2082_s10 = sphi %s2151_s10, %s2898_s10   ;;  %s2078_s30 = sphi %s2149_s30, %s2897_s30  }
   0x5   : > { %s2174_s15 = sadd.s32 1, %s2090_s12   ;;  %s224_s16 = sadd.s32 1, %s2086_s11 }
   0x6   : > { %s221_s17 = ssub.s32 %s2090_s12, %s2174_s15  ;;  %p234_p0 = scmp.ne.s32.totalorder %s2086_s11, %s2082_s10 }
   0x7   : > { %p222_p1 = scmp.eq.s32.totalorder %s221_s17, 0  ;;  %p235_p2 = scmp.eq.s32.totalorder %s2170_s13, 1 }
   0x8   : > { %p240_p3 = scmp.ne.s32.totalorder %s2082_s10, %s2078_s30  ;;  %p241_p4 = scmp.eq.s32.totalorder %s1443_s14, 1 }
   0x9   : > { %s2185_s18 = scalar_select %p222_p1, %s2086_s11, %s224_s16  }
   0xa   : > { %p2187_p5 = por %p235_p2, %p234_p0  ;;  %p2191_p6 = por %p241_p4, %p240_p3 }
   0xb   : > { %p1444_p7 = scmp.ge.s32.totalorder %s2090_s12, 1  ;;  %p248_p8 = scmp.lt.s32.totalorder %s2090_s12, 3 }
   0xc   : > { %s2888_s19 = scalar_select %p2187_p5, 1, 0 }
   0xd   : > { %s2889_s20 = scalar_select %p2191_p6, 1, 0 }
   0xe   : > { %p2885_p9 = scmp.eq.s32.totalorder %s2170_s13, 0  ;;  %p2198_p10 = pnand %p1444_p7, %p248_p8 }
   0xf   : > { %s2092_s22 = smov [#allocation2]   ;;  %s1996_s27 = scalar_lea.hbm %s2882_s7, 2048 }
  0x10   : > { %s2890_s21 = scalar_select %p2198_p10, 1, 0 }
  0x11   : > { %s278_s23 = sshll.u32 %s2092_s22, 4  ;;  %p1867_p11 = pneg %p2198_p10  ;;  %s279_s23 = int_to_ptr.vmem [resolvable:$true] %s278_s23 }
  0x12   : > { %p1997_p13 = scmp.ne.s32.totalorder %s2882_s7, %s1996_s27  ;;  %p2003_p3 = scmp.lt.u32.totalorder %s1996_s27, %s2882_s7 }
  0x13   : > { %p2206_p12 = pnand %p2885_p9, %p1867_p11 }
  0x15   : > { %p1998_p0 = pneg %p2206_p12 }
  0x17   : > { %p1999_p1 = pnand %p1998_p0, %p1997_p13 }
  0x19   : > { %p2000_p2 = pneg %p1999_p1 }
  0x1b   : > { %p2005_p4 = pnand %p2003_p3, %p2000_p2 }
  0x1d   : > { %2008 = shalt.err (!%p2005_p4)
}
  0x1e   : > { %s2009_s17 = scalar_lea.vmem %s279_s23, 2048  ;;  %p2017_p9 = scmp.lt.s32.totalorder %s279_s23, %s279_s23 }
  0x1f   : > { %p2010_p7 = scmp.ne.s32.totalorder %s279_s23, %s2009_s17  ;;  %p2018_p6 = scmp.lt.s32.totalorder %s2009_s17, %s2009_s17 }
  0x21   : > { %p2012_p8 = pnand %p2010_p7, %p1998_p0  ;;  %p2019_p5 = por %p2018_p6, %p2017_p9 }
  0x23   : > { %p2013_p11 = pneg %p2012_p8 }
  0x25   : > { %p2020_p10 = pnand %p2019_p5, %p2013_p11 }
  0x27   : > { %2023 = shalt.err (!%p2020_p10)
}
  0x28   : > { %s2093_s22 = smov 128   ;;  %s2094_s25 = smov 8  }
  0x29   : > { %1870 = dma.hbm_to_vmem [thread:$0]  (!%p2206_p12), %s2882_s7, 2048, %s279_s23, [#allocation3], %s2093_s22, %s2093_s22, %s2094_s25  }
  0x2a   : > { %p2892_p13 = scmp.ne.s32.totalorder %s2890_s21, 0 }
  0x2b   : > { %p2893_p1 = scmp.eq.s32.totalorder (!%p2892_p13), %s2170_s13, 0 }
  0x2c   : > { %306 = sbr.rel (%p2892_p13) target bundleno = 839 (0x347), region = 56 }
  0x33   : > { %2069 = dma.done.wait (%p2893_p1), [#allocation3], 2048   ;;  %p2894_p0 = pmov %p2893_p1 }
  0x34   : > { %s1450_s27 = sshll.u32 %s2170_s13, 4  ;;  %v2095_v0 = vmov 0.0   ;;  %v366_v1 = vld [vmem:[%s2876_s1 + $0x8] sm:$0xff]  ;;  %v368_v2 = vld [vmem:[%s2876_s1 + $0x18] sm:$0xff]  ;;  %v365_v3 = vld [vmem:[%s2876_s1] sm:$0xff]  ;;  %vm385_vm0 = vcmask 261120   ;;  %v375_v56 = vlaneseq }
  0x35   : > { %2071 = vsyncadd (%p2894_p0), [#allocation3], 4294965248  ;;  %498 = vmatprep.mubr.f32.mxu0 %v2095_v0  ;;  %p343_p5 = scmp.lt.s32.totalorder %s1450_s27, 31  ;;  %v1741_v4 = vpack.c.bf16 %v368_v2, %v366_v1  ;;  %v367_v5 = vld [vmem:[%s2876_s1 + $0x10] sm:$0xff]  ;;  %v370_v6 = vld [vmem:[%s2876_s1 + $0x28] sm:$0xff]  ;;  %s339_s23 = sand.u32 1, %s2082_s10  }
  0x36   : > { %v372_v7 = vld [vmem:[%s2876_s1 + $0x38] sm:$0xff]  ;;  %v1743_v8 = vpack.c.bf16 %v367_v5, %v365_v3  ;;  %v369_v10 = vld [vmem:[%s2876_s1 + $0x20] sm:$0xff]  ;;  %v371_v11 = vld [vmem:[%s2876_s1 + $0x30] sm:$0xff]  ;;  %v2364_v57 = vshrl.u32 %v375_v56, 7  ;;  %s1449_s14 = sshll.u32 %s339_s23, 7  ;;  %s1476_s17 = sshll.u32 %s2170_s13, 11 }
  0x37   : > { %s2902_s27 = smov (!%p343_p5, %s1450_s27), 31  ;;  %v1745_v9 = vpack.c.bf16 %v372_v7, %v370_v6  ;;  %1742 = vmatprep.subr.bf16.mxu0 %v1741_v4  ;;  %v1747_v12 = vpack.c.bf16 %v371_v11, %v369_v10  ;;  %v755_v14 = vld [vmem:[%s2878_s3] sm:$0xff]  ;;  %v756_v15 = vld [vmem:[%s2878_s3 + $0x8] sm:$0xff]  ;;  %v757_v16 = vld [vmem:[%s2878_s3 + $0x10] sm:$0xff]  ;;  %s2765_s16 = scalar_lea.vmem [#allocation5], %s1449_s14 }
  0x38   : > { %s1451_s29 = sshll.u32 %s2902_s27, 3  ;;  %1744 = vmatpush1.bf16.msra.mxu0 %v1743_v8  ;;  %v1749_v17 = vpack.c.bf16 %v756_v15, %v755_v14  ;;  %v758_v18 = vld [vmem:[%s2878_s3 + $0x18] sm:$0xff]  ;;  %v759_v35 = vld [vmem:[%s2878_s3 + $0x20] sm:$0xff]  ;;  %v760_v36 = vld [vmem:[%s2878_s3 + $0x28] sm:$0xff]  ;;  %v381_v58 = vsub.s32 1, %v2364_v57  ;;  %s1369_s22 = sshll.u32 %s2765_s16, 4  ;;  %s2828_s22 = int_to_ptr.vmem [resolvable:$true] %s1369_s22 }
  0x39   : > { %s2261_s25 = scalar_lea.vmem %s2875_s0, %s1451_s29  ;;  %1746 = vmatprep.subr.bf16.mxu0 %v1745_v9  ;;  %v1753_v19 = vpack.c.bf16 %v758_v18, %v757_v16  ;;  %v1757_v37 = vpack.c.bf16 %v760_v36, %v759_v35  ;;  %v761_v38 = vld [vmem:[%s2878_s3 + $0x30] sm:$0xff]  ;;  %v762_v39 = vld [vmem:[%s2878_s3 + $0x38] sm:$0xff]  ;;  %v763_v41 = vld [vmem:[%s2878_s3 + $0x40] sm:$0xff]  ;;  %s2826_s28 = scalar_lea.hbm %s2884_s9, %s1476_s17 }
  0x3a   : > { %v349_v13 = vld [vmem:[%s2261_s25] sm:$0xff]  ;;  %1750 = vmatprep.subr.bf16.mxu1 %v1749_v17  ;;  %v350_v20 = vld [vmem:[%s2261_s25 + $0x8] sm:$0xff]  ;;  %v351_v21 = vld [vmem:[%s2261_s25 + $0x10] sm:$0xff]  ;;  %v1761_v40 = vpack.c.bf16 %v762_v39, %v761_v38  ;;  %s2834_s13 = scalar_lea.sflag [#allocation4], %s339_s23  ;;  %p2895_p9 = scmp.ne.s32.totalorder %s2888_s19, 0 }
  0x3b   : > { %1752 = vmatpush3.bf16.msra.mxu1 %v1749_v17  ;;  %v352_v22 = vld [vmem:[%s2261_s25 + $0x18] sm:$0xff]  ;;  %v353_v23 = vld [vmem:[%s2261_s25 + $0x20] sm:$0xff]  ;;  %v354_v24 = vld [vmem:[%s2261_s25 + $0x28] sm:$0xff]  ;;  %s2096_s24 = smov [#allocation5]  }
  0x3c   : > { %1748 = vmatpush1.bf16.msra.mxu0 %v1747_v12  ;;  %1754 = vmatprep.subr.bf16.mxu1 %v1753_v19  ;;  %v355_v25 = vld [vmem:[%s2261_s25 + $0x30] sm:$0xff]  ;;  %v356_v26 = vld [vmem:[%s2261_s25 + $0x38] sm:$0xff]  ;;  %v357_v27 = vld [vmem:[%s2261_s25 + $0x40] sm:$0xff]  ;;  %s2028_s21 = sshll.u32 %s2096_s24, 4  ;;  %s2029_s21 = int_to_ptr.vmem [resolvable:$false] %s2028_s21 }
  0x3d   : > { %v358_v28 = vld [vmem:[%s2261_s25 + $0x48] sm:$0xff]  ;;  %v359_v29 = vld [vmem:[%s2261_s25 + $0x50] sm:$0xff]  ;;  %v360_v30 = vld [vmem:[%s2261_s25 + $0x58] sm:$0xff]  ;;  %s2030_s29 = scalar_lea.vmem %s2029_s21, 4096  ;;  %p2031_p2 = scmp.lt.s32.totalorder %s2828_s22, %s2029_s21 }
  0x3e   : > { %v361_v31 = vld [vmem:[%s2261_s25 + $0x60] sm:$0xff]  ;;  %v362_v32 = vld [vmem:[%s2261_s25 + $0x68] sm:$0xff]  ;;  %v363_v33 = vld [vmem:[%s2261_s25 + $0x70] sm:$0xff] }
  0x3f   : > { %1452 = vmatmul.mubr.msk.f32.vlgmr.msra.gmra.mrb[0].mxu0 %vm385_vm0, %v349_v13  ;;  %1756 = vmatpush3.bf16.msra.mxu1 %v1753_v19  ;;  %v364_v34 = vld [vmem:[%s2261_s25 + $0x78] sm:$0xff]  ;;  %v764_v42 = vld [vmem:[%s2878_s3 + $0x48] sm:$0xff]  ;;  %v765_v44 = vld [vmem:[%s2878_s3 + $0x50] sm:$0xff] }
  0x40   : > { %504 = vmatprep.mubr.f32.mxu0 %v2095_v0  ;;  %1758 = vmatprep.subr.bf16.mxu1 %v1757_v37  ;;  %v1765_v43 = vpack.c.bf16 %v764_v42, %v763_v41  ;;  %v766_v45 = vld [vmem:[%s2878_s3 + $0x58] sm:$0xff]  ;;  %v767_v47 = vld [vmem:[%s2878_s3 + $0x60] sm:$0xff]  ;;  %v768_v48 = vld [vmem:[%s2878_s3 + $0x68] sm:$0xff] }
  0x41   : > { %v1769_v46 = vpack.c.bf16 %v766_v45, %v765_v44  ;;  %v1773_v49 = vpack.c.bf16 %v768_v48, %v767_v47  ;;  %v769_v50 = vld [vmem:[%s2878_s3 + $0x70] sm:$0xff]  ;;  %v770_v51 = vld [vmem:[%s2878_s3 + $0x78] sm:$0xff]  ;;  %v923_v53 = vld [vmem:[%s2880_s5] sm:$0xff] }
  0x42   : > { %v1777_v52 = vpack.c.bf16 %v770_v51, %v769_v50  ;;  %v924_v54 = vld [vmem:[%s2880_s5 + $0x8] sm:$0xff]  ;;  %v2370_v59 = vld [vmem:[%s2877_s2] sm:$0x3]  ;;  %v929_v45 = vld [vmem:[%s2880_s5 + $0x30] sm:$0xff] }
  0x43   : > { %1453 = vmatmul.mubr.msk.f32.gmra.mrb[2].mxu0 %vm385_vm0, %v350_v20  ;;  %1760 = vmatpush3.bf16.msra.mxu1 %v1757_v37  ;;  %v1781_v55 = vpack.c.bf16 %v924_v54, %v923_v53  ;;  %v2373_v60 = vrot.slane %v2370_v59, %v381_v58  ;;  %v928_v35 = vld [vmem:[%s2880_s5 + $0x28] sm:$0xff]  ;;  %v931_v56 = vld [vmem:[%s2880_s5 + $0x40] sm:$0xff] }
  0x44   : > { %510 = vmatprep.mubr.f32.mxu0 %v2095_v0  ;;  %1762 = vmatprep.subr.bf16.mxu1 %v1761_v40  ;;  %v932_v58 = vld [vmem:[%s2880_s5 + $0x48] sm:$0xff] }
  0x47   : > { %1454 = vmatmul.mubr.msk.f32.gmra.mrb[4].mxu0 %vm385_vm0, %v351_v21  ;;  %1764 = vmatpush3.bf16.msra.mxu1 %v1761_v40 }
  0x48   : > { %516 = vmatprep.mubr.f32.mxu0 %v2095_v0  ;;  %1766 = vmatprep.subr.bf16.mxu1 %v1765_v43 }
  0x4b   : > { %1455 = vmatmul.mubr.msk.f32.gmra.mrb[6].mxu0 %vm385_vm0, %v352_v22  ;;  %1768 = vmatpush3.bf16.msra.mxu1 %v1765_v43 }
  0x4c   : > { %522 = vmatprep.mubr.f32.mxu0 %v2095_v0  ;;  %1770 = vmatprep.subr.bf16.mxu1 %v1769_v46 }
  0x4f   : > { %1456 = vmatmul.mubr.msk.f32.gmra.mrb[8].mxu0 %vm385_vm0, %v353_v23  ;;  %1772 = vmatpush3.bf16.msra.mxu1 %v1769_v46  ;;  %v925_v23 = vld [vmem:[%s2880_s5 + $0x10] sm:$0xff]  ;;  %v930_v46 = vld [vmem:[%s2880_s5 + $0x38] sm:$0xff] }
  0x50   : > { %528 = vmatprep.mubr.f32.mxu0 %v2095_v0  ;;  %1774 = vmatprep.subr.bf16.mxu1 %v1773_v49 }
  0x53   : > { %1457 = vmatmul.mubr.msk.f32.gmra.mrb[10].mxu0 %vm385_vm0, %v354_v24  ;;  %1776 = vmatpush3.bf16.msra.mxu1 %v1773_v49  ;;  %v926_v24 = vld [vmem:[%s2880_s5 + $0x18] sm:$0xff] }
  0x54   : > { %534 = vmatprep.mubr.f32.mxu0 %v2095_v0  ;;  %1778 = vmatprep.subr.bf16.mxu1 %v1777_v52 }
  0x57   : > { %1458 = vmatmul.mubr.msk.f32.gmra.mrb[12].mxu0 %vm385_vm0, %v355_v25  ;;  %1780 = vmatpush3.bf16.msra.mxu1 %v1777_v52  ;;  %v1793_v52 = vpack.c.bf16 %v930_v46, %v929_v45  ;;  %v377_v45 = vsub.s32 0, %v2364_v57 }
  0x58   : > { %540 = vmatprep.mubr.f32.mxu0 %v2095_v0  ;;  %1782 = vmatprep.subr.bf16.mxu1 %v1781_v55 }
  0x5b   : > { %1459 = vmatmul.mubr.msk.f32.gmra.mrb[14].mxu0 %vm385_vm0, %v356_v26 }
  0x5c   : > { %546 = vmatprep.mubr.f32.mxu0 %v2095_v0 }
  0x5f   : > { %1460 = vmatmul.mubr.msk.f32.gmra.mrb[16].mxu0 %vm385_vm0, %v357_v27 }
  0x60   : > { %552 = vmatprep.mubr.f32.mxu0 %v2095_v0 }
  0x63   : > { %1461 = vmatmul.mubr.msk.f32.gmra.mrb[18].mxu0 %vm385_vm0, %v358_v28 }
  0x64   : > { %558 = vmatprep.mubr.f32.mxu0 %v2095_v0 }
  0x67   : > { %1462 = vmatmul.mubr.msk.f32.gmra.mrb[20].mxu0 %vm385_vm0, %v359_v29 }
  0x68   : > { %564 = vmatprep.mubr.f32.mxu0 %v2095_v0 }
  0x6b   : > { %1463 = vmatmul.mubr.msk.f32.gmra.mrb[22].mxu0 %vm385_vm0, %v360_v30  ;;  %v1785_v30 = vpack.c.bf16 %v926_v24, %v925_v23  ;;  %v935_v24 = vld [vmem:[%s2880_s5 + $0x60] sm:$0xff] }
  0x6c   : > { %570 = vmatprep.mubr.f32.mxu0 %v2095_v0 }
  0x6f   : > { %1464 = vmatmul.mubr.msk.f32.gmra.mrb[24].mxu0 %vm385_vm0, %v361_v31 }
  0x70   : > { %576 = vmatprep.mubr.f32.mxu0 %v2095_v0 }
  0x73   : > { %1465 = vmatmul.mubr.msk.f32.gmra.mrb[26].mxu0 %vm385_vm0, %v362_v32 }
  0x74   : > { %582 = vmatprep.mubr.f32.mxu0 %v2095_v0 }
  0x77   : > { %1466 = vmatmul.mubr.msk.f32.gmra.mrb[28].mxu0 %vm385_vm0, %v363_v33 }
  0x78   : > { %588 = vmatprep.mubr.f32.mxu0 %v2095_v0 }
  0x7b   : > { %1467 = vmatmul.mubr.msk.f32.gmra.mrb[30].mxu0 %vm385_vm0, %v364_v34  ;;  %v927_v34 = vld [vmem:[%s2880_s5 + $0x20] sm:$0xff] }
  0x7c   : > { %v1789_v41 = vpack.c.bf16 %v928_v35, %v927_v34 }
 0x112   : > { %v2375_v61 = vpop.f32.mrb[0].mxu0 }
 0x113   : > { %v502_v62 = vpop.f32.mrb[1].mxu0 }
 0x114   : > { %v503_v63 = vadd.f32 %v502_v62, %v2373_v60 }
 0x116   : > { %v628_v0 = vmul.f32 0.70710677, %v503_v63  ;;  %v2378_v1 = vpop.f32.mrb[2].mxu0  ;;  %v596_v15 = vmul.f32 0.5, %v503_v63 }
 0x117   : > { %v508_v2 = vpop.f32.mrb[3].mxu0 }
 0x118   : > { %1916 = verf.f32 %v628_v0  ;;  %v509_v3 = vadd.f32 %v508_v2, %v2373_v60 }
 0x11a   : > { %v630_v4 = vmul.f32 0.70710677, %v509_v3  ;;  %v2381_v5 = vpop.f32.mrb[4].mxu0  ;;  %v598_v25 = vmul.f32 0.5, %v509_v3 }
 0x11b   : > { %v514_v6 = vpop.f32.mrb[5].mxu0 }
 0x11c   : > { %1918 = verf.f32 %v630_v4  ;;  %v515_v7 = vadd.f32 %v514_v6, %v2373_v60  ;;  %v1797_v4 = vpack.c.bf16 %v932_v58, %v931_v56  ;;  %v2482_v58 = vrot.slane %v2370_v59, %v377_v45 }
 0x11e   : > { %v632_v8 = vmul.f32 0.70710677, %v515_v7  ;;  %v2384_v9 = vpop.f32.mrb[6].mxu0  ;;  %v600_v36 = vmul.f32 0.5, %v515_v7  ;;  %v2492_v59 = vadd.f32 %v2375_v61, %v2482_v58 }
 0x11f   : > { %v520_v10 = vpop.f32.mrb[7].mxu0 }
 0x120   : > { %1920 = verf.f32 %v632_v8  ;;  %v521_v11 = vadd.f32 %v520_v10, %v2373_v60  ;;  %v933_v10 = vld [vmem:[%s2880_s5 + $0x50] sm:$0xff]  ;;  %v627_v61 = vmul.f32 0.70710677, %v2492_v59 }
 0x122   : > { %v1917_v12 = vpop.eup %1916  ;;  %v634_v13 = vmul.f32 0.70710677, %v521_v11  ;;  %v2387_v14 = vpop.f32.mrb[8].mxu0  ;;  %v602_v47 = vmul.f32 0.5, %v521_v11  ;;  %v934_v11 = vld [vmem:[%s2880_s5 + $0x58] sm:$0xff] }
 0x123   : > { %v526_v16 = vpop.f32.mrb[9].mxu0  ;;  %v692_v17 = vadd.f32 1.0, %v1917_v12 }
 0x124   : > { %1922 = verf.f32 %v634_v13  ;;  %v527_v18 = vadd.f32 %v526_v16, %v2373_v60 }
 0x125   : > { %v2390_v19 = vmul.f32 %v692_v17, %v596_v15 }
 0x126   : > { %v1919_v20 = vpop.eup %1918  ;;  %v636_v21 = vmul.f32 0.70710677, %v527_v18  ;;  %v2392_v22 = vpop.f32.mrb[10].mxu0  ;;  %v604_v62 = vmul.f32 0.5, %v527_v18  ;;  %v1801_v18 = vpack.c.bf16 %v934_v11, %v933_v10 }
 0x127   : > { %v694_v26 = vadd.f32 1.0, %v1919_v20  ;;  %v532_v27 = vpop.f32.mrb[11].mxu0  ;;  %1605 = vmatprep.mubr.f32.mxu1 %v2390_v19 }
 0x128   : > { %1924 = verf.f32 %v636_v21  ;;  %v533_v28 = vadd.f32 %v532_v27, %v2373_v60 }
 0x129   : > { %v2402_v29 = vmul.f32 %v694_v26, %v598_v25  ;;  %v936_v25 = vld [vmem:[%s2880_s5 + $0x68] sm:$0xff] }
 0x12a   : > { %v1921_v31 = vpop.eup %1920  ;;  %v638_v32 = vmul.f32 0.70710677, %v533_v28  ;;  %v2404_v33 = vpop.f32.mrb[12].mxu0  ;;  %v606_v12 = vmul.f32 0.5, %v533_v28 }
 0x12b   : > { %v696_v37 = vadd.f32 1.0, %v1921_v31  ;;  %v538_v38 = vpop.f32.mrb[13].mxu0  ;;  %1606 = vmatmul.mubr.f32.vlgmr.msra.gmra.mrb[0].mxu1 %v2402_v29 }
 0x12c   : > { %1926 = verf.f32 %v638_v32  ;;  %v539_v39 = vadd.f32 %v538_v38, %v2373_v60  ;;  %1784 = vmatpush3.bf16.msra.mxu1 %v1781_v55  ;;  %v1805_v32 = vpack.c.bf16 %v936_v25, %v935_v24  ;;  %v938_v38 = vld [vmem:[%s2880_s5 + $0x78] sm:$0xff]  ;;  %v2507_v24 = vadd.f32 %v2381_v5, %v2482_v58 }
 0x12d   : > { %v2414_v40 = vmul.f32 %v696_v37, %v600_v36  ;;  %1786 = vmatprep.subr.bf16.mxu1 %v1785_v30  ;;  %v937_v37 = vld [vmem:[%s2880_s5 + $0x70] sm:$0xff] }
 0x12e   : > { %v1923_v42 = vpop.eup %1922  ;;  %v640_v43 = vmul.f32 0.70710677, %v539_v39  ;;  %v2416_v44 = vpop.f32.mrb[14].mxu0  ;;  %v608_v26 = vmul.f32 0.5, %v539_v39 }
 0x12f   : > { %v698_v48 = vadd.f32 1.0, %v1923_v42  ;;  %v544_v49 = vpop.f32.mrb[15].mxu0  ;;  %1608 = vmatprep.mubr.f32.mxu1 %v2414_v40 }
 0x130   : > { %1928 = verf.f32 %v640_v43  ;;  %v545_v50 = vadd.f32 %v544_v49, %v2373_v60  ;;  %1788 = vmatpush3.bf16.msra.mxu1 %v1785_v30 }
 0x131   : > { %v2426_v51 = vmul.f32 %v698_v48, %v602_v47  ;;  %1790 = vmatprep.subr.bf16.mxu1 %v1789_v41  ;;  %v1809_v47 = vpack.c.bf16 %v938_v38, %v937_v37  ;;  %v631_v37 = vmul.f32 0.70710677, %v2507_v24  ;;  %v2523_v38 = vadd.f32 %v2387_v14, %v2482_v58 }
 0x132   : > { %v1925_v53 = vpop.eup %1924  ;;  %v642_v54 = vmul.f32 0.70710677, %v545_v50  ;;  %v2428_v55 = vpop.f32.mrb[16].mxu0  ;;  %v610_v39 = vmul.f32 0.5, %v545_v50 }
 0x133   : > { %v700_v63 = vadd.f32 1.0, %v1925_v53  ;;  %v550_v0 = vpop.f32.mrb[17].mxu0  ;;  %1609 = vmatmul.mubr.f32.gmra.mrb[2].mxu1 %v2426_v51  ;;  %v635_v14 = vmul.f32 0.70710677, %v2523_v38 }
 0x134   : > { %1930 = verf.f32 %v642_v54  ;;  %v551_v2 = vadd.f32 %v550_v0, %v2373_v60  ;;  %1792 = vmatpush3.bf16.msra.mxu1 %v1789_v41 }
 0x135   : > { %v2438_v3 = vmul.f32 %v700_v63, %v604_v62  ;;  %1794 = vmatprep.subr.bf16.mxu1 %v1793_v52 }
 0x136   : > { %v1927_v6 = vpop.eup %1926  ;;  %v644_v7 = vmul.f32 0.70710677, %v551_v2  ;;  %v2440_v8 = vpop.f32.mrb[18].mxu0  ;;  %v612_v53 = vmul.f32 0.5, %v551_v2 }
 0x137   : > { %v702_v13 = vadd.f32 1.0, %v1927_v6  ;;  %v556_v15 = vpop.f32.mrb[19].mxu0  ;;  %1611 = vmatprep.mubr.f32.mxu1 %v2438_v3 }
 0x138   : > { %1932 = verf.f32 %v644_v7  ;;  %v557_v16 = vadd.f32 %v556_v15, %v2373_v60  ;;  %1796 = vmatpush3.bf16.msra.mxu1 %v1793_v52  ;;  %v2500_v15 = vadd.f32 %v2378_v1, %v2482_v58 }
 0x139   : > { %v2450_v17 = vmul.f32 %v702_v13, %v606_v12  ;;  %1798 = vmatprep.subr.bf16.mxu1 %v1797_v4 }
 0x13a   : > { %v1929_v20 = vpop.eup %1928  ;;  %v646_v21 = vmul.f32 0.70710677, %v557_v16  ;;  %v2452_v23 = vpop.f32.mrb[20].mxu0 }
 0x13b   : > { %v704_v27 = vadd.f32 1.0, %v1929_v20  ;;  %v562_v28 = vpop.f32.mrb[21].mxu0  ;;  %1612 = vmatmul.mubr.f32.gmra.mrb[4].mxu1 %v2450_v17 }
 0x13c   : > { %1934 = verf.f32 %v646_v21  ;;  %v563_v30 = vadd.f32 %v562_v28, %v2373_v60  ;;  %1800 = vmatpush3.bf16.msra.mxu1 %v1797_v4  ;;  %v614_v4 = vmul.f32 0.5, %v557_v16  ;;  %v629_v28 = vmul.f32 0.70710677, %v2500_v15 }
 0x13d   : > { %v2462_v31 = vmul.f32 %v704_v27, %v608_v26  ;;  %1802 = vmatprep.subr.bf16.mxu1 %v1801_v18 }
 0x13e   : > { %v1931_v34 = vpop.eup %1930  ;;  %v648_v35 = vmul.f32 0.70710677, %v563_v30  ;;  %v2464_v36 = vpop.f32.mrb[22].mxu0  ;;  %v616_v16 = vmul.f32 0.5, %v563_v30 }
 0x13f   : > { %v706_v41 = vadd.f32 1.0, %v1931_v34  ;;  %v568_v42 = vpop.f32.mrb[23].mxu0  ;;  %1614 = vmatprep.mubr.f32.mxu1 %v2462_v31 }
 0x140   : > { %1936 = verf.f32 %v648_v35  ;;  %v569_v43 = vadd.f32 %v568_v42, %v2373_v60  ;;  %1804 = vmatpush3.bf16.msra.mxu1 %v1801_v18  ;;  %v2517_v35 = vadd.f32 %v2384_v9, %v2482_v58 }
 0x141   : > { %v2475_v46 = vmul.f32 %v706_v41, %v610_v39  ;;  %1806 = vmatprep.subr.bf16.mxu1 %v1805_v32 }
 0x142   : > { %v1933_v48 = vpop.eup %1932  ;;  %v650_v49 = vmul.f32 0.70710677, %v569_v43  ;;  %v2477_v52 = vpop.f32.mrb[24].mxu0  ;;  %v618_v30 = vmul.f32 0.5, %v569_v43  ;;  %v633_v9 = vmul.f32 0.70710677, %v2517_v35 }
 0x143   : > { %v708_v50 = vadd.f32 1.0, %v1933_v48  ;;  %v574_v54 = vpop.f32.mrb[25].mxu0  ;;  %1615 = vmatmul.mubr.f32.gmra.mrb[6].mxu1 %v2475_v46 }
 0x144   : > { %1938 = verf.f32 %v650_v49  ;;  %v575_v56 = vadd.f32 %v574_v54, %v2373_v60  ;;  %1808 = vmatpush3.bf16.msra.mxu1 %v1805_v32 }
 0x145   : > { %v2484_v57 = vmul.f32 %v708_v50, %v612_v53  ;;  %1810 = vmatprep.subr.bf16.mxu1 %v1809_v47 }
 0x146   : > { %v1935_v62 = vpop.eup %1934  ;;  %v652_v63 = vmul.f32 0.70710677, %v575_v56  ;;  %v2486_v0 = vpop.f32.mrb[26].mxu0  ;;  %v620_v43 = vmul.f32 0.5, %v575_v56 }
 0x147   : > { %v710_v2 = vadd.f32 1.0, %v1935_v62  ;;  %v580_v6 = vpop.f32.mrb[27].mxu0  ;;  %1617 = vmatprep.mubr.f32.mxu1 %v2484_v57 }
 0x148   : > { %1940 = verf.f32 %v652_v63  ;;  %v581_v7 = vadd.f32 %v580_v6, %v2373_v60  ;;  %1812 = vmatpush3.bf16.msra.mxu1 %v1809_v47  ;;  %v2536_v47 = vadd.f32 %v2404_v33, %v2482_v58  ;;  %v2549_v33 = vadd.f32 %v2428_v55, %v2482_v58 }
 0x149   : > { %v2494_v10 = vmul.f32 %v710_v2, %v614_v4 }
 0x14a   : > { %v1937_v11 = vpop.eup %1936  ;;  %v654_v12 = vmul.f32 0.70710677, %v581_v7  ;;  %v2496_v13 = vpop.f32.mrb[28].mxu0  ;;  %v622_v53 = vmul.f32 0.5, %v581_v7  ;;  %v639_v56 = vmul.f32 0.70710677, %v2536_v47 }
 0x14b   : > { %v712_v18 = vadd.f32 1.0, %v1937_v11  ;;  %v586_v20 = vpop.f32.mrb[29].mxu0  ;;  %1618 = vmatmul.mubr.f32.gmra.mrb[8].mxu1 %v2494_v10  ;;  %v643_v55 = vmul.f32 0.70710677, %v2549_v33 }
 0x14c   : > { %1942 = verf.f32 %v654_v12  ;;  %v587_v21 = vadd.f32 %v586_v20, %v2373_v60  ;;  %v2562_v12 = vadd.f32 %v2452_v23, %v2482_v58 }
 0x14d   : > { %v2509_v25 = vmul.f32 %v712_v18, %v616_v16 }
 0x14e   : > { %v1939_v26 = vpop.eup %1938  ;;  %v656_v27 = vmul.f32 0.70710677, %v587_v21  ;;  %v2511_v1 = vpop.f32.mrb[30].mxu0  ;;  %v624_v2 = vmul.f32 0.5, %v587_v21  ;;  %v647_v23 = vmul.f32 0.70710677, %v2562_v12 }
 0x14f   : > { %v714_v32 = vadd.f32 1.0, %v1939_v26  ;;  %v592_v34 = vpop.f32.mrb[31].mxu0  ;;  %1620 = vmatprep.mubr.f32.mxu1 %v2509_v25 }
 0x150   : > { %1944 = verf.f32 %v656_v27  ;;  %v593_v5 = vadd.f32 %v592_v34, %v2373_v60  ;;  %v2531_v60 = vadd.f32 %v2392_v22, %v2482_v58  ;;  %v2544_v22 = vadd.f32 %v2416_v44, %v2482_v58 }
 0x151   : > { %1946 = verf.f32 %v627_v61  ;;  %v2525_v39 = vmul.f32 %v714_v32, %v618_v30  ;;  %v2557_v44 = vadd.f32 %v2440_v8, %v2482_v58  ;;  %v595_v61 = vmul.f32 0.5, %v2492_v59 }
 0x152   : > { %v1941_v41 = vpop.eup %1940  ;;  %v658_v42 = vmul.f32 0.70710677, %v593_v5  ;;  %1948 = verf.f32 %v629_v28  ;;  %v637_v54 = vmul.f32 0.70710677, %v2531_v60  ;;  %v641_v7 = vmul.f32 0.70710677, %v2544_v22 }
 0x153   : > { %v716_v45 = vadd.f32 1.0, %v1941_v41  ;;  %1621 = vmatmul.mubr.f32.gmra.mrb[10].mxu1 %v2525_v39  ;;  %v626_v26 = vmul.f32 0.5, %v593_v5  ;;  %v645_v28 = vmul.f32 0.70710677, %v2557_v44  ;;  %v2571_v30 = vadd.f32 %v2464_v36, %v2482_v58 }
 0x154   : > { %1950 = verf.f32 %v658_v42  ;;  %v2576_v32 = vadd.f32 %v2477_v52, %v2482_v58  ;;  %v597_v5 = vmul.f32 0.5, %v2500_v15  ;;  %v2590_v52 = vadd.f32 %v2486_v0, %v2482_v58 }
 0x155   : > { %1952 = verf.f32 %v631_v37  ;;  %v2538_v48 = vmul.f32 %v716_v45, %v620_v43  ;;  %v599_v43 = vmul.f32 0.5, %v2507_v24  ;;  %v649_v45 = vmul.f32 0.70710677, %v2571_v30 }
 0x156   : > { %v1943_v49 = vpop.eup %1942  ;;  %1954 = verf.f32 %v633_v9  ;;  %v651_v9 = vmul.f32 0.70710677, %v2576_v32  ;;  %v2596_v24 = vadd.f32 %v2496_v13, %v2482_v58  ;;  %v603_v0 = vmul.f32 0.5, %v2523_v38 }
 0x157   : > { %v718_v50 = vadd.f32 1.0, %v1943_v49  ;;  %1623 = vmatprep.mubr.f32.mxu1 %v2538_v48  ;;  %1956 = verf.f32 %v635_v14  ;;  %v605_v38 = vmul.f32 0.5, %v2531_v60  ;;  %v611_v60 = vmul.f32 0.5, %v2549_v33 }
 0x158   : > { %1958 = verf.f32 %v637_v54  ;;  %v601_v54 = vmul.f32 0.5, %v2517_v35 }
 0x159   : > { %v2551_v62 = vmul.f32 %v718_v50, %v622_v53  ;;  %1960 = verf.f32 %v639_v56  ;;  %v653_v56 = vmul.f32 0.70710677, %v2590_v52 }
 0x15a   : > { %v1945_v63 = vpop.eup %1944  ;;  %1962 = verf.f32 %v641_v7 }
 0x15b   : > { %v1947_v4 = vpop.eup %1946  ;;  %v720_v6 = vadd.f32 1.0, %v1945_v63  ;;  %1624 = vmatmul.mubr.f32.gmra.mrb[12].mxu1 %v2551_v62  ;;  %1964 = verf.f32 %v643_v55  ;;  %v591_v63 = vadd.f32 %v2511_v1, %v2482_v58  ;;  %v607_v55 = vmul.f32 0.5, %v2536_v47 }
 0x15c   : > { %v1949_v11 = vpop.eup %1948  ;;  %v691_v20 = vadd.f32 1.0, %v1947_v4  ;;  %1966 = verf.f32 %v645_v28  ;;  %v655_v4 = vmul.f32 0.70710677, %v2596_v24 }
 0x15d   : > { %v2564_v16 = vmul.f32 %v720_v6, %v624_v2  ;;  %v693_v8 = vadd.f32 1.0, %v1949_v11  ;;  %1968 = verf.f32 %v647_v23  ;;  %v657_v58 = vmul.f32 0.70710677, %v591_v63 }
 0x15e   : > { %v1951_v18 = vpop.eup %1950  ;;  %v2581_v41 = vmul.f32 %v691_v20, %v595_v61  ;;  %1970 = verf.f32 %v649_v45 }
 0x15f   : > { %v1953_v21 = vpop.eup %1952  ;;  %v722_v27 = vadd.f32 1.0, %v1951_v18  ;;  %1626 = vmatprep.mubr.f32.mxu1 %v2564_v16  ;;  %v2585_v36 = vmul.f32 %v693_v8, %v597_v5  ;;  %1972 = verf.f32 %v651_v9 }
 0x160   : > { %v1955_v34 = vpop.eup %1954  ;;  %v695_v37 = vadd.f32 1.0, %v1953_v21  ;;  %1974 = verf.f32 %v653_v56  ;;  %v621_v56 = vmul.f32 0.5, %v2590_v52  ;;  %v1139_v52 = vld [vmem:[#allocation2] sm:$0xff] }
 0x161   : > { %v2578_v59 = vmul.f32 %v722_v27, %v626_v26  ;;  %v1957_v42 = vpop.eup %1956  ;;  %v697_v15 = vadd.f32 1.0, %v1955_v34  ;;  %1976 = verf.f32 %v655_v4  ;;  %v609_v27 = vmul.f32 0.5, %v2544_v22 }
 0x162   : > { %v1959_v14 = vpop.eup %1958  ;;  %v699_v49 = vadd.f32 1.0, %v1957_v42  ;;  %v2598_v53 = vmul.f32 %v695_v37, %v599_v43  ;;  %1978 = verf.f32 %v657_v58  ;;  %v613_v37 = vmul.f32 0.5, %v2557_v44 }
 0x163   : > { %1627 = vmatmul.mubr.f32.gmra.mrb[14].mxu1 %v2578_v59  ;;  %v1961_v50 = vpop.eup %1960  ;;  %v701_v13 = vadd.f32 1.0, %v1959_v14  ;;  %v2608_v2 = vmul.f32 %v697_v15, %v601_v54  ;;  %v615_v22 = vmul.f32 0.5, %v2562_v12  ;;  %v617_v14 = vmul.f32 0.5, %v2571_v30 }
 0x164   : > { %1661 = vmatprep.mubr.f32.mxu1 %v2581_v41  ;;  %v1963_v6 = vpop.eup %1962  ;;  %v703_v35 = vadd.f32 1.0, %v1961_v50  ;;  %v2610_v7 = vmul.f32 %v699_v49, %v603_v0  ;;  %v619_v44 = vmul.f32 0.5, %v2576_v32 }
 0x165   : > { %v1965_v11 = vpop.eup %1964  ;;  %v705_v1 = vadd.f32 1.0, %v1963_v6  ;;  %v2616_v18 = vmul.f32 %v701_v13, %v605_v38  ;;  %v623_v13 = vmul.f32 0.5, %v2596_v24  ;;  %v625_v6 = vmul.f32 0.5, %v591_v63  ;;  %v1141_v24 = vld [vmem:[#allocation2 + $0x10] sm:$0xff]  ;;  %v1143_v63 = vld [vmem:[#allocation2 + $0x20] sm:$0xff] }
 0x166   : > { %v1967_v20 = vpop.eup %1966  ;;  %v707_v21 = vadd.f32 1.0, %v1965_v11  ;;  %v2618_v61 = vmul.f32 %v703_v35, %v607_v55  ;;  %v1140_v11 = vld [vmem:[#allocation2 + $0x8] sm:$0xff]  ;;  %v1142_v55 = vld [vmem:[#allocation2 + $0x18] sm:$0xff] }
 0x167   : > { %1662 = vmatmul.mubr.f32.vlgmr.msra.gmra.mrb[16].mxu1 %v2585_v36  ;;  %v1969_v26 = vpop.eup %1968  ;;  %v709_v47 = vadd.f32 1.0, %v1967_v20  ;;  %v2624_v8 = vmul.f32 %v705_v1, %v609_v27  ;;  %v1813_v38 = vpack.c.bf16 %v1140_v11, %v1139_v52  ;;  %v1817_v58 = vpack.c.bf16 %v1142_v55, %v1141_v24  ;;  %v1144_v1 = vld [vmem:[#allocation2 + $0x28] sm:$0xff] }
 0x168   : > { %1664 = vmatprep.mubr.f32.mxu1 %v2598_v53  ;;  %v1971_v28 = vpop.eup %1970  ;;  %v711_v23 = vadd.f32 1.0, %v1969_v26  ;;  %v2626_v34 = vmul.f32 %v707_v21, %v611_v60  ;;  %v1821_v20 = vpack.c.bf16 %v1144_v1, %v1143_v63  ;;  %v1145_v21 = vld [vmem:[#allocation2 + $0x30] sm:$0xff]  ;;  %v1146_v26 = vld [vmem:[#allocation2 + $0x38] sm:$0xff]  ;;  %v1147_v60 = vld [vmem:[#allocation2 + $0x40] sm:$0xff] }
 0x169   : > { %v1973_v5 = vpop.eup %1972  ;;  %v713_v33 = vadd.f32 1.0, %v1971_v28  ;;  %v2632_v42 = vmul.f32 %v709_v47, %v613_v37  ;;  %1814 = vmatprep.subr.bf16.mxu0 %v1813_v38  ;;  %1845 = vmatprep.subr.bf16.mxu1 %v1813_v38  ;;  %v1825_v27 = vpack.c.bf16 %v1146_v26, %v1145_v21  ;;  %v1148_v47 = vld [vmem:[#allocation2 + $0x48] sm:$0xff]  ;;  %v2668_v63 = vld [vmem:[%s2879_s4] ss:$0 sm:$0xff] }
 0x16a   : > { %v1975_v43 = vpop.eup %1974  ;;  %v715_v45 = vadd.f32 1.0, %v1973_v5  ;;  %v2634_v15 = vmul.f32 %v711_v23, %v615_v22  ;;  %1816 = vmatpush3.bf16.msra.mxu0 %v1813_v38  ;;  %1853 = vmatpush3.bf16.msra.mxu1 %v1813_v38  ;;  %v1829_v28 = vpack.c.bf16 %v1148_v47, %v1147_v60  ;;  %v1149_v23 = vld [vmem:[#allocation2 + $0x50] sm:$0xff]  ;;  %v1150_v5 = vld [vmem:[#allocation2 + $0x58] sm:$0xff]  ;;  %v1151_v22 = vld [vmem:[#allocation2 + $0x60] sm:$0xff] }
 0x16b   : > { %1665 = vmatmul.mubr.f32.gmra.mrb[18].mxu1 %v2608_v2  ;;  %v1977_v9 = vpop.eup %1976  ;;  %v717_v49 = vadd.f32 1.0, %v1975_v43  ;;  %v2640_v12 = vmul.f32 %v713_v33, %v617_v14  ;;  %1818 = vmatprep.subr.bf16.mxu0 %v1817_v58  ;;  %v1833_v37 = vpack.c.bf16 %v1150_v5, %v1149_v23  ;;  %v1152_v33 = vld [vmem:[#allocation2 + $0x68] sm:$0xff]  ;;  %v2677_v21 = vld [vmem:[%s2881_s6] ss:$0 sm:$0xff] }
 0x16c   : > { %1667 = vmatprep.mubr.f32.mxu1 %v2610_v7  ;;  %v1979_v50 = vpop.eup %1978  ;;  %v719_v54 = vadd.f32 1.0, %v1977_v9  ;;  %v2642_v0 = vmul.f32 %v715_v45, %v619_v44  ;;  %1846 = vmatprep.subr.bf16.mxu1 %v1817_v58  ;;  %v1837_v43 = vpack.c.bf16 %v1152_v33, %v1151_v22  ;;  %v1153_v45 = vld [vmem:[#allocation2 + $0x70] sm:$0xff]  ;;  %v1154_v9 = vld [vmem:[#allocation2 + $0x78] sm:$0xff] }
 0x16d   : > { %v721_v30 = vadd.f32 1.0, %v1979_v50  ;;  %v2648_v4 = vmul.f32 %v717_v49, %v621_v56  ;;  %v1841_v14 = vpack.c.bf16 %v1154_v9, %v1153_v45 }
 0x16e   : > { %v2650_v32 = vmul.f32 %v719_v54, %v623_v13  ;;  %1820 = vmatpush3.bf16.msra.mxu0 %v1817_v58  ;;  %1854 = vmatpush3.bf16.msra.mxu1 %v1817_v58 }
 0x16f   : > { %1668 = vmatmul.mubr.f32.gmra.mrb[20].mxu1 %v2616_v18  ;;  %v2654_v35 = vmul.f32 %v721_v30, %v625_v6  ;;  %1822 = vmatprep.subr.bf16.mxu0 %v1821_v20 }
 0x170   : > { %1670 = vmatprep.mubr.f32.mxu1 %v2618_v61  ;;  %1847 = vmatprep.subr.bf16.mxu1 %v1821_v20 }
 0x172   : > { %1824 = vmatpush3.bf16.msra.mxu0 %v1821_v20  ;;  %1855 = vmatpush3.bf16.msra.mxu1 %v1821_v20 }
 0x173   : > { %1671 = vmatmul.mubr.f32.gmra.mrb[22].mxu1 %v2624_v8  ;;  %1826 = vmatprep.subr.bf16.mxu0 %v1825_v27 }
 0x174   : > { %1673 = vmatprep.mubr.f32.mxu1 %v2626_v34  ;;  %1848 = vmatprep.subr.bf16.mxu1 %v1825_v27 }
 0x176   : > { %1828 = vmatpush3.bf16.msra.mxu0 %v1825_v27  ;;  %1856 = vmatpush3.bf16.msra.mxu1 %v1825_v27 }
 0x177   : > { %1674 = vmatmul.mubr.f32.gmra.mrb[24].mxu1 %v2632_v42  ;;  %1830 = vmatprep.subr.bf16.mxu0 %v1829_v28 }
 0x178   : > { %1676 = vmatprep.mubr.f32.mxu1 %v2634_v15  ;;  %1849 = vmatprep.subr.bf16.mxu1 %v1829_v28 }
 0x17a   : > { %1832 = vmatpush3.bf16.msra.mxu0 %v1829_v28  ;;  %1857 = vmatpush3.bf16.msra.mxu1 %v1829_v28 }
 0x17b   : > { %1677 = vmatmul.mubr.f32.gmra.mrb[26].mxu1 %v2640_v12  ;;  %1834 = vmatprep.subr.bf16.mxu0 %v1833_v37 }
 0x17c   : > { %1679 = vmatprep.mubr.f32.mxu1 %v2642_v0  ;;  %1850 = vmatprep.subr.bf16.mxu1 %v1833_v37 }
 0x17e   : > { %1836 = vmatpush3.bf16.msra.mxu0 %v1833_v37  ;;  %1858 = vmatpush3.bf16.msra.mxu1 %v1833_v37 }
 0x17f   : > { %1680 = vmatmul.mubr.f32.gmra.mrb[28].mxu1 %v2648_v4  ;;  %1838 = vmatprep.subr.bf16.mxu0 %v1837_v43 }
 0x180   : > { %1682 = vmatprep.mubr.f32.mxu1 %v2650_v32  ;;  %1851 = vmatprep.subr.bf16.mxu1 %v1837_v43 }
 0x182   : > { %1840 = vmatpush3.bf16.msra.mxu0 %v1837_v43  ;;  %1859 = vmatpush3.bf16.msra.mxu1 %v1837_v43 }
 0x183   : > { %1683 = vmatmul.mubr.f32.gmra.mrb[30].mxu1 %v2654_v35  ;;  %1842 = vmatprep.subr.bf16.mxu0 %v1841_v14 }
 0x184   : > { %1852 = vmatprep.subr.bf16.mxu1 %v1841_v14 }
 0x186   : > { %1844 = vmatpush3.bf16.msra.mxu0 %v1841_v14  ;;  %1860 = vmatpush3.bf16.msra.mxu1 %v1841_v14 }
 0x1fe   : > { %v1607_v44 = vpop.f32.mrb[0].mxu1 }
 0x1ff   : > { %v844_v49 = vpop.f32.mrb[1].mxu1  ;;  %v850_v26 = vadd.f32 %v1607_v44, %v2668_v63 }
 0x200   : > { %v845_v27 = vadd.f32 %v2668_v63, %v844_v49 }
 0x201   : > { %v1092_v5 = vmul.f32 %v850_v26, %v2585_v36 }
 0x202   : > { %v1091_v33 = vmul.f32 %v845_v27, %v2581_v41 }
 0x206   : > { %v1610_v50 = vpop.f32.mrb[2].mxu1 }
 0x207   : > { %v854_v54 = vpop.f32.mrb[3].mxu1  ;;  %v860_v37 = vadd.f32 %v1610_v50, %v2668_v63 }
 0x208   : > { %v855_v43 = vadd.f32 %v2668_v63, %v854_v54 }
 0x209   : > { %v1094_v36 = vmul.f32 %v860_v37, %v2608_v2 }
 0x20a   : > { %v1093_v41 = vmul.f32 %v855_v43, %v2598_v53 }
 0x20e   : > { %v1613_v56 = vpop.f32.mrb[4].mxu1 }
 0x20f   : > { %v864_v13 = vpop.f32.mrb[5].mxu1  ;;  %v870_v50 = vadd.f32 %v1613_v56, %v2668_v63 }
 0x210   : > { %v865_v54 = vadd.f32 %v2668_v63, %v864_v13 }
 0x211   : > { %v1096_v56 = vmul.f32 %v870_v50, %v2616_v18 }
 0x212   : > { %v1095_v13 = vmul.f32 %v865_v54, %v2610_v7 }
 0x216   : > { %v1616_v30 = vpop.f32.mrb[6].mxu1 }
 0x217   : > { %v874_v6 = vpop.f32.mrb[7].mxu1 }
 0x21e   : > { %v1619_v52 = vpop.f32.mrb[8].mxu1 }
 0x21f   : > { %v884_v11 = vpop.f32.mrb[9].mxu1 }
 0x226   : > { %v2657_v38 = vpop.f32.mrb[10].mxu1 }
 0x227   : > { %v2659_v24 = vpop.f32.mrb[11].mxu1 }
 0x22e   : > { %v2661_v55 = vpop.f32.mrb[12].mxu1 }
 0x22f   : > { %v2663_v58 = vpop.f32.mrb[13].mxu1 }
 0x236   : > { %v2670_v1 = vpop.f32.mrb[14].mxu1 }
 0x237   : > { %v2672_v20 = vpop.f32.mrb[15].mxu1 }
 0x23a   : > { %v1663_v60 = vpop.f32.mrb[16].mxu1 }
 0x23b   : > { %v1018_v47 = vadd.f32 %v1663_v60, %v2677_v21  ;;  %v1012_v28 = vpop.f32.mrb[17].mxu1 }
 0x23c   : > { %v1013_v23 = vadd.f32 %v2677_v21, %v1012_v28 }
 0x23d   : > { %v1108_v22 = vmul.f32 %v1018_v47, %v2402_v29 }
 0x23e   : > { %v1107_v45 = vmul.f32 %v1013_v23, %v2390_v19  ;;  %v1666_v9 = vpop.f32.mrb[18].mxu1 }
 0x23f   : > { %v1124_v14 = vadd.f32 %v1108_v22, %v1092_v5  ;;  %v1028_v44 = vadd.f32 %v1666_v9, %v2677_v21  ;;  %v1022_v49 = vpop.f32.mrb[19].mxu1 }
 0x240   : > { %v1023_v60 = vadd.f32 %v2677_v21, %v1022_v49  ;;  %v1123_v28 = vadd.f32 %v1107_v45, %v1091_v33 }
 0x241   : > { %v1110_v29 = vmul.f32 %v1028_v44, %v2426_v51  ;;  %v880_v51 = vadd.f32 %v1616_v30, %v2668_v63 }
 0x242   : > { %v1109_v19 = vmul.f32 %v1023_v60, %v2414_v40  ;;  %v1669_v26 = vpop.f32.mrb[20].mxu1  ;;  %1717 = vmatprep.mubr.f32.mxu0 %v1123_v28  ;;  %v875_v40 = vadd.f32 %v2668_v63, %v874_v6 }
 0x243   : > { %v1038_v27 = vadd.f32 %v1669_v26, %v2677_v21  ;;  %v1032_v47 = vpop.f32.mrb[21].mxu1  ;;  %1718 = vmatmul.mubr.f32.vlgmr.msra.gmra.mrb[32].mxu0 %v1124_v14  ;;  %v1126_v23 = vadd.f32 %v1110_v29, %v1094_v36  ;;  %v1098_v30 = vmul.f32 %v880_v51, %v2624_v8 }
 0x244   : > { %v1033_v5 = vadd.f32 %v2677_v21, %v1032_v47  ;;  %v1125_v2 = vadd.f32 %v1109_v19, %v1093_v41  ;;  %v1097_v6 = vmul.f32 %v875_v40, %v2618_v61 }
 0x245   : > { %v1112_v53 = vmul.f32 %v1038_v27, %v2450_v17  ;;  %v890_v17 = vadd.f32 %v1619_v52, %v2668_v63 }
 0x246   : > { %v1111_v37 = vmul.f32 %v1033_v5, %v2438_v3  ;;  %v1672_v22 = vpop.f32.mrb[22].mxu1  ;;  %1720 = vmatprep.mubr.f32.mxu0 %v1125_v2  ;;  %v885_v3 = vadd.f32 %v2668_v63, %v884_v11 }
 0x247   : > { %v1048_v33 = vadd.f32 %v1672_v22, %v2677_v21  ;;  %v1042_v43 = vpop.f32.mrb[23].mxu1  ;;  %1721 = vmatmul.mubr.f32.gmra.mrb[34].mxu0 %v1126_v23  ;;  %v1128_v45 = vadd.f32 %v1112_v53, %v1096_v56  ;;  %v1100_v52 = vmul.f32 %v890_v17, %v2632_v42 }
 0x248   : > { %v1043_v9 = vadd.f32 %v2677_v21, %v1042_v43  ;;  %v1127_v18 = vadd.f32 %v1111_v37, %v1095_v13  ;;  %v1099_v11 = vmul.f32 %v885_v3, %v2626_v34  ;;  %v1981_v43 = vld [vmem:[%s2261_s25] sm:$0xff] }
 0x249   : > { %v1114_v7 = vmul.f32 %v1048_v33, %v2475_v46  ;;  %v900_v46 = vadd.f32 %v2657_v38, %v2668_v63 }
 0x24a   : > { %v1113_v14 = vmul.f32 %v1043_v9, %v2462_v31  ;;  %v1675_v44 = vpop.f32.mrb[24].mxu1  ;;  %1723 = vmatprep.mubr.f32.mxu0 %v1127_v18  ;;  %v895_v31 = vadd.f32 %v2668_v63, %v2659_v24 }
 0x24b   : > { %v1058_v49 = vadd.f32 %v1675_v44, %v2677_v21  ;;  %v1052_v60 = vpop.f32.mrb[25].mxu1  ;;  %1724 = vmatmul.mubr.f32.gmra.mrb[36].mxu0 %v1128_v45  ;;  %v1130_v28 = vadd.f32 %v1114_v7, %v1098_v30  ;;  %v1102_v38 = vmul.f32 %v900_v46, %v2640_v12  ;;  %v1307_v45 = vsel %vm385_vm0, %v1981_v43, 0.0  ;;  %v1982_v7 = vld [vmem:[%s2261_s25 + $0x18] sm:$0xff]  ;;  %v1983_v44 = vld [vmem:[%s2261_s25 + $0x10] sm:$0xff] }
 0x24c   : > { %v1053_v36 = vadd.f32 %v2677_v21, %v1052_v60  ;;  %v1129_v8 = vadd.f32 %v1113_v14, %v1097_v6  ;;  %v1101_v24 = vmul.f32 %v895_v31, %v2634_v15  ;;  %v1310_v6 = vsel %vm385_vm0, %v1982_v7, 0.0  ;;  %v1985_v31 = vld [vmem:[%s2261_s25 + $0x20] sm:$0xff] }
 0x24d   : > { %v1116_v61 = vmul.f32 %v1058_v49, %v2494_v10  ;;  %v910_v10 = vadd.f32 %v2661_v55, %v2668_v63  ;;  %v1309_v49 = vsel %vm385_vm0, %v1983_v44, 0.0 }
 0x24e   : > { %v1115_v50 = vmul.f32 %v1053_v36, %v2484_v57  ;;  %v1678_v29 = vpop.f32.mrb[26].mxu1  ;;  %1726 = vmatprep.mubr.f32.mxu0 %v1129_v8  ;;  %v905_v57 = vadd.f32 %v2668_v63, %v2663_v58 }
 0x24f   : > { %v1068_v41 = vadd.f32 %v1678_v29, %v2677_v21  ;;  %v1062_v54 = vpop.f32.mrb[27].mxu1  ;;  %1727 = vmatmul.mubr.f32.gmra.mrb[38].mxu0 %v1130_v28  ;;  %v1132_v19 = vadd.f32 %v1116_v61, %v1100_v52  ;;  %v1104_v55 = vmul.f32 %v910_v10, %v2648_v4  ;;  %v1984_v52 = vld [vmem:[%s2261_s25 + $0x28] sm:$0xff] }
 0x250   : > { %v1063_v42 = vadd.f32 %v2677_v21, %v1062_v54  ;;  %v1131_v26 = vadd.f32 %v1115_v50, %v1099_v11  ;;  %v1103_v58 = vmul.f32 %v905_v57, %v2642_v0  ;;  %v1312_v46 = vsel %vm385_vm0, %v1984_v52, 0.0 }
 0x251   : > { %v1118_v34 = vmul.f32 %v1068_v41, %v2525_v39  ;;  %v920_v39 = vadd.f32 %v2670_v1, %v2668_v63  ;;  %v1311_v50 = vsel %vm385_vm0, %v1985_v31, 0.0 }
 0x252   : > { %v1117_v27 = vmul.f32 %v1063_v42, %v2509_v25  ;;  %v1681_v47 = vpop.f32.mrb[28].mxu1  ;;  %1729 = vmatprep.mubr.f32.mxu0 %v1131_v26  ;;  %v915_v25 = vadd.f32 %v2668_v63, %v2672_v20  ;;  %v1986_v42 = vld [vmem:[%s2261_s25 + $0x38] sm:$0xff] }
 0x253   : > { %v1078_v23 = vadd.f32 %v1681_v47, %v2677_v21  ;;  %v1072_v5 = vpop.f32.mrb[29].mxu1  ;;  %1730 = vmatmul.mubr.f32.gmra.mrb[40].mxu0 %v1132_v19  ;;  %v1134_v2 = vadd.f32 %v1118_v34, %v1102_v38  ;;  %v1106_v0 = vmul.f32 %v920_v39, %v2654_v35  ;;  %v1314_v26 = vsel %vm385_vm0, %v1986_v42, 0.0  ;;  %v1987_v34 = vld [vmem:[%s2261_s25 + $0x30] sm:$0xff] }
 0x254   : > { %v1073_v12 = vadd.f32 %v2677_v21, %v1072_v5  ;;  %v1133_v56 = vadd.f32 %v1117_v27, %v1101_v24  ;;  %v1105_v63 = vmul.f32 %v915_v25, %v2650_v32  ;;  %v1980_v32 = vld [vmem:[%s2261_s25 + $0x8] sm:$0xff]  ;;  %v1313_v24 = vsel %vm385_vm0, %v1987_v34, 0.0 }
 0x255   : > { %v1120_v15 = vmul.f32 %v1078_v23, %v2551_v62  ;;  %v1988_v5 = vld [vmem:[%s2261_s25 + $0x48] sm:$0xff] }
 0x256   : > { %v1119_v51 = vmul.f32 %v1073_v12, %v2538_v48  ;;  %v1684_v53 = vpop.f32.mrb[30].mxu1  ;;  %1732 = vmatprep.mubr.f32.mxu0 %v1133_v56 }
 0x257   : > { %v1088_v13 = vadd.f32 %v1684_v53, %v2677_v21  ;;  %v1082_v40 = vpop.f32.mrb[31].mxu1  ;;  %1733 = vmatmul.mubr.f32.gmra.mrb[42].mxu0 %v1134_v2  ;;  %v1136_v4 = vadd.f32 %v1120_v15, %v1104_v55  ;;  %v1316_v2 = vsel %vm385_vm0, %v1988_v5, 0.0  ;;  %v1989_v55 = vld [vmem:[%s2261_s25 + $0x40] sm:$0xff]  ;;  %v1990_v53 = vld [vmem:[%s2261_s25 + $0x58] sm:$0xff] }
 0x258   : > { %v1083_v1 = vadd.f32 %v2677_v21, %v1082_v40  ;;  %v1135_v62 = vadd.f32 %v1119_v51, %v1103_v58  ;;  %v2753_v21 = vld [vmem:[%s2883_s8] ss:$0 sm:$0xff]  ;;  %v1315_v39 = vsel %vm385_vm0, %v1989_v55, 0.0 }
 0x259   : > { %v1122_v37 = vmul.f32 %v1088_v13, %v2578_v59  ;;  %v1318_v13 = vsel %vm385_vm0, %v1990_v53, 0.0 }
 0x25a   : > { %v1121_v48 = vmul.f32 %v1083_v1, %v2564_v16  ;;  %1735 = vmatprep.mubr.f32.mxu0 %v1135_v62  ;;  %v1308_v16 = vsel %vm385_vm0, %v1980_v32, 0.0  ;;  %v1991_v1 = vld [vmem:[%s2261_s25 + $0x50] sm:$0xff] }
 0x25b   : > { %v1138_v20 = vadd.f32 %v1122_v37, %v1106_v0  ;;  %1736 = vmatmul.mubr.f32.gmra.mrb[44].mxu0 %v1136_v4  ;;  %v1317_v62 = vsel %vm385_vm0, %v1991_v1, 0.0 }
 0x25c   : > { %v1137_v22 = vadd.f32 %v1121_v48, %v1105_v63 }
 0x25e   : > { %1738 = vmatprep.mubr.f32.mxu1 %v1137_v22 }
 0x25f   : > { %1739 = vmatmul.mubr.f32.vlgmr.msra.gmra.mrb[32].mxu1 %v1138_v20  ;;  %v1992_v20 = vld [vmem:[%s2261_s25 + $0x68] sm:$0xff] }
 0x260   : > { %v1320_v22 = vsel %vm385_vm0, %v1992_v20, 0.0 }
 0x316   : > { %v1719_v59 = vpop.f32.mrb[32].mxu0 }
 0x317   : > { %v1234_v35 = vadd.f32 %v1719_v59, %v2753_v21  ;;  %v1228_v33 = vpop.f32.mrb[33].mxu0 }
 0x318   : > { %v1229_v9 = vadd.f32 %v2753_v21, %v1228_v33 }
 0x319   : > { %v1324_v18 = vadd.f32 %v1308_v16, %v1234_v35  ;;  %v1993_v16 = vld [vmem:[%s2261_s25 + $0x60] sm:$0xff] }
 0x31a   : > { %v1323_v30 = vadd.f32 %v1307_v45, %v1229_v9  ;;  %v1722_v17 = vpop.f32.mrb[34].mxu0  ;;  %v1319_v35 = vsel %vm385_vm0, %v1993_v16, 0.0 }
 0x31b   : > { %1340 = vst [vmem:[%s2765_s16 + $0x8] sm:$0xff] %v1324_v18  ;;  %v1244_v3 = vadd.f32 %v1722_v17, %v2753_v21  ;;  %v1238_v14 = vpop.f32.mrb[35].mxu0  ;;  %v1994_v18 = vld [vmem:[%s2261_s25 + $0x78] sm:$0xff] }
 0x31c   : > { %1339 = vst [vmem:[%s2765_s16] sm:$0xff] %v1323_v30  ;;  %v1239_v60 = vadd.f32 %v2753_v21, %v1238_v14  ;;  %v1322_v30 = vsel %vm385_vm0, %v1994_v18, 0.0 }
 0x31d   : > { %v1326_v28 = vadd.f32 %v1310_v6, %v1244_v3  ;;  %v1995_v6 = vld [vmem:[%s2261_s25 + $0x70] sm:$0xff]  ;;  %s2024_s25 = scalar_lea.vmem %s2828_s22, 2048 }
 0x31e   : > { %v1325_v36 = vadd.f32 %v1309_v49, %v1239_v60  ;;  %v1725_v8 = vpop.f32.mrb[36].mxu0  ;;  %v1321_v3 = vsel %vm385_vm0, %v1995_v6, 0.0  ;;  %p2025_p6 = scmp.ne.s32.totalorder %s2828_s22, %s2024_s25  ;;  %p2032_p3 = scmp.lt.s32.totalorder %s2030_s29, %s2024_s25 }
 0x31f   : > { %1342 = vst [vmem:[%s2765_s16 + $0x18] sm:$0xff] %v1326_v28  ;;  %v1254_v61 = vadd.f32 %v1725_v8, %v2753_v21  ;;  %v1248_v11 = vpop.f32.mrb[37].mxu0 }
 0x320   : > { %1341 = vst [vmem:[%s2765_s16 + $0x10] sm:$0xff] %v1325_v36  ;;  %v1249_v29 = vadd.f32 %v2753_v21, %v1248_v11  ;;  %p2026_p10 = pnand %p2025_p6, %p2895_p9  ;;  %p2033_p4 = por %p2032_p3, %p2031_p2 }
 0x321   : > { %v1328_v41 = vadd.f32 %v1312_v46, %v1254_v61 }
 0x322   : > { %v1327_v54 = vadd.f32 %v1311_v50, %v1249_v29  ;;  %v1728_v19 = vpop.f32.mrb[38].mxu0  ;;  %p2027_p12 = pneg %p2026_p10 }
 0x323   : > { %1344 = vst [vmem:[%s2765_s16 + $0x28] sm:$0xff] %v1328_v41  ;;  %v1264_v38 = vadd.f32 %v1728_v19, %v2753_v21  ;;  %v1258_v10 = vpop.f32.mrb[39].mxu0 }
 0x324   : > { %1343 = vst [vmem:[%s2765_s16 + $0x20] sm:$0xff] %v1327_v54  ;;  %v1259_v57 = vadd.f32 %v2753_v21, %v1258_v10  ;;  %p2034_p7 = pnand %p2033_p4, %p2027_p12 }
 0x325   : > { %v1330_v27 = vadd.f32 %v1314_v26, %v1264_v38 }
 0x326   : > { %v1329_v47 = vadd.f32 %v1313_v24, %v1259_v57  ;;  %v1731_v23 = vpop.f32.mrb[40].mxu0 }
 0x327   : > { %1346 = vst [vmem:[%s2765_s16 + $0x38] sm:$0xff] %v1330_v27  ;;  %v1274_v12 = vadd.f32 %v1731_v23, %v2753_v21  ;;  %v1268_v56 = vpop.f32.mrb[41].mxu0 }
 0x328   : > { %1345 = vst [vmem:[%s2765_s16 + $0x30] sm:$0xff] %v1329_v47  ;;  %v1269_v15 = vadd.f32 %v2753_v21, %v1268_v56 }
 0x329   : > { %v1332_v58 = vadd.f32 %v1316_v2, %v1274_v12 }
 0x32a   : > { %v1331_v25 = vadd.f32 %v1315_v39, %v1269_v15  ;;  %v1734_v51 = vpop.f32.mrb[42].mxu0 }
 0x32b   : > { %1348 = vst [vmem:[%s2765_s16 + $0x48] sm:$0xff] %v1332_v58  ;;  %v1284_v40 = vadd.f32 %v1734_v51, %v2753_v21  ;;  %v1278_v4 = vpop.f32.mrb[43].mxu0 }
 0x32c   : > { %1347 = vst [vmem:[%s2765_s16 + $0x40] sm:$0xff] %v1331_v25  ;;  %v1279_v0 = vadd.f32 %v2753_v21, %v1278_v4 }
 0x32d   : > { %v1334_v37 = vadd.f32 %v1318_v13, %v1284_v40 }
 0x32e   : > { %v1333_v63 = vadd.f32 %v1317_v62, %v1279_v0  ;;  %v1737_v48 = vpop.f32.mrb[44].mxu0 }
 0x32f   : > { %1350 = vst [vmem:[%s2765_s16 + $0x58] sm:$0xff] %v1334_v37  ;;  %v1294_v59 = vadd.f32 %v1737_v48, %v2753_v21  ;;  %v1288_v32 = vpop.f32.mrb[45].mxu0 }
 0x330   : > { %1349 = vst [vmem:[%s2765_s16 + $0x50] sm:$0xff] %v1333_v63  ;;  %v1289_v33 = vadd.f32 %v2753_v21, %v1288_v32 }
 0x331   : > { %v1336_v43 = vadd.f32 %v1320_v22, %v1294_v59 }
 0x332   : > { %v1335_v45 = vadd.f32 %v1319_v35, %v1289_v33  ;;  %v1740_v9 = vpop.f32.mrb[32].mxu1 }
 0x333   : > { %1352 = vst [vmem:[%s2765_s16 + $0x68] sm:$0xff] %v1336_v43  ;;  %v1304_v17 = vadd.f32 %v1740_v9, %v2753_v21  ;;  %v1298_v7 = vpop.f32.mrb[33].mxu1 }
 0x334   : > { %1351 = vst [vmem:[%s2765_s16 + $0x60] sm:$0xff] %v1335_v45  ;;  %v1299_v14 = vadd.f32 %v2753_v21, %v1298_v7 }
 0x335   : > { %v1338_v44 = vadd.f32 %v1322_v30, %v1304_v17 }
 0x336   : > { %v1337_v49 = vadd.f32 %v1321_v3, %v1299_v14 }
 0x337   : > { %1354 = vst [vmem:[%s2765_s16 + $0x78] sm:$0xff] %v1338_v44 }
 0x338   : > { %1353 = vst [vmem:[%s2765_s16 + $0x70] sm:$0xff] %v1337_v49 }
 0x339   : > { %2037 = shalt.err (!%p2034_p7)
}
 0x33a   : > { %s2038_s23 = scalar_lea.hbm %s2826_s28, 2048  ;;  %s2042_s17 = scalar_lea.hbm %s2884_s9, 4096 }
 0x33b   : > { %p2039_p8 = scmp.ne.s32.totalorder %s2826_s28, %s2038_s23  ;;  %p2043_p1 = scmp.lt.u32.totalorder %s2826_s28, %s2884_s9 }
 0x33c   : > { %p2044_p0 = scmp.lt.u32.totalorder %s2042_s17, %s2038_s23  ;;  %p2046_p6 = scmp.lt.u32.totalorder %s2038_s23, %s2826_s28 }
 0x33d   : > { %p2040_p11 = pnand %p2039_p8, %p2895_p9 }
 0x33e   : > { %p2045_p5 = por %p2044_p0, %p2043_p1 }
 0x33f   : > { %p2041_p13 = pneg %p2040_p11 }
 0x340   : > { %p2047_p10 = por %p2046_p6, %p2045_p5 }
 0x342   : > { %p2048_p12 = pnand %p2047_p10, %p2041_p13 }
 0x344   : > { %2051 = shalt.err (!%p2048_p12)
}
 0x345   : > { %s2097_s25 = smov 128   ;;  %s2098_s24 = smov 8  }
 0x346   : > { %1865 = dma.vmem_to_hbm [thread:$0]  (%p2895_p9), %s2828_s22, 2048, %s2826_s28, %s2834_s13, %s2097_s25, %s2097_s25, %s2098_s24  }
 0x347 PF: > { %p1877_p2 = scmp.ge.s32.totalorder %s2090_s12, 2  ;;  %s1384_s21 = sand.u32 1, %s2078_s30  }
 0x348   : > { %p2896_p3 = scmp.ne.s32.totalorder %s2889_s20, 0  ;;  %s1385_s29 = scalar_lea.sflag [#allocation4], %s1384_s21 }
 0x34a   : > { %p1872_p4 = pnand %p1877_p2, %p2896_p3 }
 0x34c   : > { %2073 = dma.done.wait (!%p1872_p4), %s1385_s29, 2048  }
 0x34d   : > { %2075 = vsyncadd (!%p1872_p4), %s1385_s29, 4294965248  ;;  %p20_p7 = scmp.ge.s32.totalorder %s2174_s15, 4   ;;  %s2897_s30 = smov %s2082_s10 }
 0x34e   : > { %s2898_s10 = smov %s2086_s11  ;;  %s2899_s11 = smov %s2185_s18 }
 0x34f   : > { %s2900_s12 = smov %s2174_s15  ;;  %22 = sbr.rel (!%p20_p7) target bundleno = 4 (0x4), region = 96 }
 0x356   :  { %1390 = vsyncpa [#allocation3], 1 }
 0x357   :  { %1392 = vsyncpa [#allocation3 + $0x1], 1 }
 0x358   :  { %1393 = vsyncpa [#allocation4], 1 }
 0x359   :  { %1395 = vsyncpa [#allocation4 + $0x1], 1 }

// kernel: tpu_custom_call.1
= control target key start
LH: loop header
LB: loop body
LE: loop exit
PB: predicated region body
PF: predicated region fallthrough
CT: control target
= control target key end

     0   :  { %14 = vsyncpa [#allocation3], 0  ;;  %s2875_s0 = inlined_call_operand.vmem [shape: f32[256,32], index: 0, kind: input, shape index: {}]   ;;  %s2876_s1 = inlined_call_operand.vmem [shape: f32[32,256], index: 1, kind: input, shape index: {}]   ;;  %s2877_s2 = inlined_call_operand.vmem [shape: f32[1,256], index: 2, kind: input, shape index: {}]   ;;  %s2878_s3 = inlined_call_operand.vmem [shape: f32[128,128], index: 3, kind: input, shape index: {}]   ;;  %s2879_s4 = inlined_call_operand.vmem [shape: f32[1,128], index: 4, kind: input, shape index: {}]   ;;  %s2880_s5 = inlined_call_operand.vmem [shape: f32[128,128], index: 5, kind: input, shape index: {}]   ;;  %s2881_s6 = inlined_call_operand.vmem [shape: f32[1,128], index: 6, kind: input, shape index: {}]   ;;  %s2882_s7 = inlined_call_operand.hbm [shape: f32[128,128], index: 7, kind: input, shape index: {}]   ;;  %s2883_s8 = inlined_call_operand.vmem [shape: f32[1,128], index: 8, kind: input, shape index: {}]   ;;  %s2884_s9 = inlined_call_operand.hbm [shape: f32[256,128], index: 9, kind: output, shape index: {}]  }
   0x1   :  { %15 = vsyncpa [#allocation4], 0 }
   0x2   :  { %17 = vsyncpa [#allocation4 + $0x1], 0  ;;  %s2149_s30 = smov 0   ;;  %s2151_s10 = smov 0  }
   0x3   :  { %s2153_s11 = smov 0   ;;  %s2155_s12 = smov 0  }
   0x4 LB: > { %s2170_s13 = sadd.s32 4294967295, %s2090_s12   ;;  %s1443_s14 = sadd.s32 4294967294, %s2090_s12   ;;  %s2090_s12 = sphi %s2155_s12, %s2900_s12   ;;  %s2086_s11 = sphi %s2153_s11, %s2899_s11   ;;  %s2082_s10 = sphi %s2151_s10, %s2898_s10   ;;  %s2078_s30 = sphi %s2149_s30, %s2897_s30  }
   0x5   : > { %s2174_s15 = sadd.s32 1, %s2090_s12   ;;  %s224_s16 = sadd.s32 1, %s2086_s11 }
   0x6   : > { %s221_s17 = ssub.s32 %s2090_s12, %s2174_s15  ;;  %p234_p0 = scmp.ne.s32.totalorder %s2086_s11, %s2082_s10 }
   0x7   : > { %p222_p1 = scmp.eq.s32.totalorder %s221_s17, 0  ;;  %p235_p2 = scmp.eq.s32.totalorder %s2170_s13, 1 }
   0x8   : > { %p240_p3 = scmp.ne.s32.totalorder %s2082_s10, %s2078_s30  ;;  %p241_p4 = scmp.eq.s32.totalorder %s1443_s14, 1 }
   0x9   : > { %s2185_s18 = scalar_select %p222_p1, %s2086_s11, %s224_s16  }
   0xa   : > { %p2187_p5 = por %p235_p2, %p234_p0  ;;  %p2191_p6 = por %p241_p4, %p240_p3 }
   0xb   : > { %p1444_p7 = scmp.ge.s32.totalorder %s2090_s12, 1  ;;  %p248_p8 = scmp.lt.s32.totalorder %s2090_s12, 3 }
   0xc   : > { %s2888_s19 = scalar_select %p2187_p5, 1, 0 }
   0xd   : > { %s2889_s20 = scalar_select %p2191_p6, 1, 0 }
   0xe   : > { %p2885_p9 = scmp.eq.s32.totalorder %s2170_s13, 0  ;;  %p2198_p10 = pnand %p1444_p7, %p248_p8 }
   0xf   : > { %s2092_s22 = smov [#allocation2]   ;;  %s1996_s27 = scalar_lea.hbm %s2882_s7, 2048 }
  0x10   : > { %s2890_s21 = scalar_select %p2198_p10, 1, 0 }
  0x11   : > { %s278_s23 = sshll.u32 %s2092_s22, 4  ;;  %p1867_p11 = pneg %p2198_p10  ;;  %s279_s23 = int_to_ptr.vmem [resolvable:$true] %s278_s23 }
  0x12   : > { %p1997_p13 = scmp.ne.s32.totalorder %s2882_s7, %s1996_s27  ;;  %p2003_p3 = scmp.lt.u32.totalorder %s1996_s27, %s2882_s7 }
  0x13   : > { %p2206_p12 = pnand %p2885_p9, %p1867_p11 }
  0x15   : > { %p1998_p0 = pneg %p2206_p12 }
  0x17   : > { %p1999_p1 = pnand %p1998_p0, %p1997_p13 }
  0x19   : > { %p2000_p2 = pneg %p1999_p1 }
  0x1b   : > { %p2005_p4 = pnand %p2003_p3, %p2000_p2 }
  0x1d   : > { %2008 = shalt.err (!%p2005_p4)
}
  0x1e   : > { %s2009_s17 = scalar_lea.vmem %s279_s23, 2048  ;;  %p2017_p9 = scmp.lt.s32.totalorder %s279_s23, %s279_s23 }
  0x1f   : > { %p2010_p7 = scmp.ne.s32.totalorder %s279_s23, %s2009_s17  ;;  %p2018_p6 = scmp.lt.s32.totalorder %s2009_s17, %s2009_s17 }
  0x21   : > { %p2012_p8 = pnand %p2010_p7, %p1998_p0  ;;  %p2019_p5 = por %p2018_p6, %p2017_p9 }
  0x23   : > { %p2013_p11 = pneg %p2012_p8 }
  0x25   : > { %p2020_p10 = pnand %p2019_p5, %p2013_p11 }
  0x27   : > { %2023 = shalt.err (!%p2020_p10)
}
  0x28   : > { %s2093_s22 = smov 128   ;;  %s2094_s25 = smov 8  }
  0x29   : > { %1870 = dma.hbm_to_vmem [thread:$0]  (!%p2206_p12), %s2882_s7, 2048, %s279_s23, [#allocation3], %s2093_s22, %s2093_s22, %s2094_s25  }
  0x2a   : > { %p2892_p13 = scmp.ne.s32.totalorder %s2890_s21, 0 }
  0x2b   : > { %p2893_p1 = scmp.eq.s32.totalorder (!%p2892_p13), %s2170_s13, 0 }
  0x2c   : > { %306 = sbr.rel (%p2892_p13) target bundleno = 839 (0x347), region = 56 }
  0x33   : > { %2069 = dma.done.wait (%p2893_p1), [#allocation3], 2048   ;;  %p2894_p0 = pmov %p2893_p1 }
  0x34   : > { %s1450_s27 = sshll.u32 %s2170_s13, 4  ;;  %v2095_v0 = vmov 0.0   ;;  %v366_v1 = vld [vmem:[%s2876_s1 + $0x8] sm:$0xff]  ;;  %v368_v2 = vld [vmem:[%s2876_s1 + $0x18] sm:$0xff]  ;;  %v365_v3 = vld [vmem:[%s2876_s1] sm:$0xff]  ;;  %vm385_vm0 = vcmask 261120   ;;  %v375_v56 = vlaneseq }
  0x35   : > { %2071 = vsyncadd (%p2894_p0), [#allocation3], 4294965248  ;;  %498 = vmatprep.mubr.f32.mxu0 %v2095_v0  ;;  %p343_p5 = scmp.lt.s32.totalorder %s1450_s27, 31  ;;  %v1741_v4 = vpack.c.bf16 %v368_v2, %v366_v1  ;;  %v367_v5 = vld [vmem:[%s2876_s1 + $0x10] sm:$0xff]  ;;  %v370_v6 = vld [vmem:[%s2876_s1 + $0x28] sm:$0xff]  ;;  %s339_s23 = sand.u32 1, %s2082_s10  }
  0x36   : > { %v372_v7 = vld [vmem:[%s2876_s1 + $0x38] sm:$0xff]  ;;  %v1743_v8 = vpack.c.bf16 %v367_v5, %v365_v3  ;;  %v369_v10 = vld [vmem:[%s2876_s1 + $0x20] sm:$0xff]  ;;  %v371_v11 = vld [vmem:[%s2876_s1 + $0x30] sm:$0xff]  ;;  %v2364_v57 = vshrl.u32 %v375_v56, 7  ;;  %s1449_s14 = sshll.u32 %s339_s23, 7  ;;  %s1476_s17 = sshll.u32 %s2170_s13, 11 }
  0x37   : > { %s2902_s27 = smov (!%p343_p5, %s1450_s27), 31  ;;  %v1745_v9 = vpack.c.bf16 %v372_v7, %v370_v6  ;;  %1742 = vmatprep.subr.bf16.mxu0 %v1741_v4  ;;  %v1747_v12 = vpack.c.bf16 %v371_v11, %v369_v10  ;;  %v755_v14 = vld [vmem:[%s2878_s3] sm:$0xff]  ;;  %v756_v15 = vld [vmem:[%s2878_s3 + $0x8] sm:$0xff]  ;;  %v757_v16 = vld [vmem:[%s2878_s3 + $0x10] sm:$0xff]  ;;  %s2765_s16 = scalar_lea.vmem [#allocation5], %s1449_s14 }
  0x38   : > { %s1451_s29 = sshll.u32 %s2902_s27, 3  ;;  %1744 = vmatpush1.bf16.msra.mxu0 %v1743_v8  ;;  %v1749_v17 = vpack.c.bf16 %v756_v15, %v755_v14  ;;  %v758_v18 = vld [vmem:[%s2878_s3 + $0x18] sm:$0xff]  ;;  %v759_v35 = vld [vmem:[%s2878_s3 + $0x20] sm:$0xff]  ;;  %v760_v36 = vld [vmem:[%s2878_s3 + $0x28] sm:$0xff]  ;;  %v381_v58 = vsub.s32 1, %v2364_v57  ;;  %s1369_s22 = sshll.u32 %s2765_s16, 4  ;;  %s2828_s22 = int_to_ptr.vmem [resolvable:$true] %s1369_s22 }
  0x39   : > { %s2261_s25 = scalar_lea.vmem %s2875_s0, %s1451_s29  ;;  %1746 = vmatprep.subr.bf16.mxu0 %v1745_v9  ;;  %v1753_v19 = vpack.c.bf16 %v758_v18, %v757_v16  ;;  %v1757_v37 = vpack.c.bf16 %v760_v36, %v759_v35  ;;  %v761_v38 = vld [vmem:[%s2878_s3 + $0x30] sm:$0xff]  ;;  %v762_v39 = vld [vmem:[%s2878_s3 + $0x38] sm:$0xff]  ;;  %v763_v41 = vld [vmem:[%s2878_s3 + $0x40] sm:$0xff]  ;;  %s2826_s28 = scalar_lea.hbm %s2884_s9, %s1476_s17 }
  0x3a   : > { %v349_v13 = vld [vmem:[%s2261_s25] sm:$0xff]  ;;  %1750 = vmatprep.subr.bf16.mxu1 %v1749_v17  ;;  %v350_v20 = vld [vmem:[%s2261_s25 + $0x8] sm:$0xff]  ;;  %v351_v21 = vld [vmem:[%s2261_s25 + $0x10] sm:$0xff]  ;;  %v1761_v40 = vpack.c.bf16 %v762_v39, %v761_v38  ;;  %s2834_s13 = scalar_lea.sflag [#allocation4], %s339_s23  ;;  %p2895_p9 = scmp.ne.s32.totalorder %s2888_s19, 0 }
  0x3b   : > { %1752 = vmatpush3.bf16.msra.mxu1 %v1749_v17  ;;  %v352_v22 = vld [vmem:[%s2261_s25 + $0x18] sm:$0xff]  ;;  %v353_v23 = vld [vmem:[%s2261_s25 + $0x20] sm:$0xff]  ;;  %v354_v24 = vld [vmem:[%s2261_s25 + $0x28] sm:$0xff]  ;;  %s2096_s24 = smov [#allocation5]  }
  0x3c   : > { %1748 = vmatpush1.bf16.msra.mxu0 %v1747_v12  ;;  %1754 = vmatprep.subr.bf16.mxu1 %v1753_v19  ;;  %v355_v25 = vld [vmem:[%s2261_s25 + $0x30] sm:$0xff]  ;;  %v356_v26 = vld [vmem:[%s2261_s25 + $0x38] sm:$0xff]  ;;  %v357_v27 = vld [vmem:[%s2261_s25 + $0x40] sm:$0xff]  ;;  %s2028_s21 = sshll.u32 %s2096_s24, 4  ;;  %s2029_s21 = int_to_ptr.vmem [resolvable:$false] %s2028_s21 }
  0x3d   : > { %v358_v28 = vld [vmem:[%s2261_s25 + $0x48] sm:$0xff]  ;;  %v359_v29 = vld [vmem:[%s2261_s25 + $0x50] sm:$0xff]  ;;  %v360_v30 = vld [vmem:[%s2261_s25 + $0x58] sm:$0xff]  ;;  %s2030_s29 = scalar_lea.vmem %s2029_s21, 4096  ;;  %p2031_p2 = scmp.lt.s32.totalorder %s2828_s22, %s2029_s21 }
  0x3e   : > { %v361_v31 = vld [vmem:[%s2261_s25 + $0x60] sm:$0xff]  ;;  %v362_v32 = vld [vmem:[%s2261_s25 + $0x68] sm:$0xff]  ;;  %v363_v33 = vld [vmem:[%s2261_s25 + $0x70] sm:$0xff] }
  0x3f   : > { %1452 = vmatmul.mubr.msk.f32.vlgmr.msra.gmra.mrb[0].mxu0 %vm385_vm0, %v349_v13  ;;  %1756 = vmatpush3.bf16.msra.mxu1 %v1753_v19  ;;  %v364_v34 = vld [vmem:[%s2261_s25 + $0x78] sm:$0xff]  ;;  %v764_v42 = vld [vmem:[%s2878_s3 + $0x48] sm:$0xff]  ;;  %v765_v44 = vld [vmem:[%s2878_s3 + $0x50] sm:$0xff] }
  0x40   : > { %504 = vmatprep.mubr.f32.mxu0 %v2095_v0  ;;  %1758 = vmatprep.subr.bf16.mxu1 %v1757_v37  ;;  %v1765_v43 = vpack.c.bf16 %v764_v42, %v763_v41  ;;  %v766_v45 = vld [vmem:[%s2878_s3 + $0x58] sm:$0xff]  ;;  %v767_v47 = vld [vmem:[%s2878_s3 + $0x60] sm:$0xff]  ;;  %v768_v48 = vld [vmem:[%s2878_s3 + $0x68] sm:$0xff] }
  0x41   : > { %v1769_v46 = vpack.c.bf16 %v766_v45, %v765_v44  ;;  %v1773_v49 = vpack.c.bf16 %v768_v48, %v767_v47  ;;  %v769_v50 = vld [vmem:[%s2878_s3 + $0x70] sm:$0xff]  ;;  %v770_v51 = vld [vmem:[%s2878_s3 + $0x78] sm:$0xff]  ;;  %v923_v53 = vld [vmem:[%s2880_s5] sm:$0xff] }
  0x42   : > { %v1777_v52 = vpack.c.bf16 %v770_v51, %v769_v50  ;;  %v924_v54 = vld [vmem:[%s2880_s5 + $0x8] sm:$0xff]  ;;  %v2370_v59 = vld [vmem:[%s2877_s2] sm:$0x3]  ;;  %v929_v45 = vld [vmem:[%s2880_s5 + $0x30] sm:$0xff] }
  0x43   : > { %1453 = vmatmul.mubr.msk.f32.gmra.mrb[2].mxu0 %vm385_vm0, %v350_v20  ;;  %1760 = vmatpush3.bf16.msra.mxu1 %v1757_v37  ;;  %v1781_v55 = vpack.c.bf16 %v924_v54, %v923_v53  ;;  %v2373_v60 = vrot.slane %v2370_v59, %v381_v58  ;;  %v928_v35 = vld [vmem:[%s2880_s5 + $0x28] sm:$0xff]  ;;  %v931_v56 = vld [vmem:[%s2880_s5 + $0x40] sm:$0xff] }
  0x44   : > { %510 = vmatprep.mubr.f32.mxu0 %v2095_v0  ;;  %1762 = vmatprep.subr.bf16.mxu1 %v1761_v40  ;;  %v932_v58 = vld [vmem:[%s2880_s5 + $0x48] sm:$0xff] }
  0x47   : > { %1454 = vmatmul.mubr.msk.f32.gmra.mrb[4].mxu0 %vm385_vm0, %v351_v21  ;;  %1764 = vmatpush3.bf16.msra.mxu1 %v1761_v40 }
  0x48   : > { %516 = vmatprep.mubr.f32.mxu0 %v2095_v0  ;;  %1766 = vmatprep.subr.bf16.mxu1 %v1765_v43 }
  0x4b   : > { %1455 = vmatmul.mubr.msk.f32.gmra.mrb[6].mxu0 %vm385_vm0, %v352_v22  ;;  %1768 = vmatpush3.bf16.msra.mxu1 %v1765_v43 }
  0x4c   : > { %522 = vmatprep.mubr.f32.mxu0 %v2095_v0  ;;  %1770 = vmatprep.subr.bf16.mxu1 %v1769_v46 }
  0x4f   : > { %1456 = vmatmul.mubr.msk.f32.gmra.mrb[8].mxu0 %vm385_vm0, %v353_v23  ;;  %1772 = vmatpush3.bf16.msra.mxu1 %v1769_v46  ;;  %v925_v23 = vld [vmem:[%s2880_s5 + $0x10] sm:$0xff]  ;;  %v930_v46 = vld [vmem:[%s2880_s5 + $0x38] sm:$0xff] }
  0x50   : > { %528 = vmatprep.mubr.f32.mxu0 %v2095_v0  ;;  %1774 = vmatprep.subr.bf16.mxu1 %v1773_v49 }
  0x53   : > { %1457 = vmatmul.mubr.msk.f32.gmra.mrb[10].mxu0 %vm385_vm0, %v354_v24  ;;  %1776 = vmatpush3.bf16.msra.mxu1 %v1773_v49  ;;  %v926_v24 = vld [vmem:[%s2880_s5 + $0x18] sm:$0xff] }
  0x54   : > { %534 = vmatprep.mubr.f32.mxu0 %v2095_v0  ;;  %1778 = vmatprep.subr.bf16.mxu1 %v1777_v52 }
  0x57   : > { %1458 = vmatmul.mubr.msk.f32.gmra.mrb[12].mxu0 %vm385_vm0, %v355_v25  ;;  %1780 = vmatpush3.bf16.msra.mxu1 %v1777_v52  ;;  %v1793_v52 = vpack.c.bf16 %v930_v46, %v929_v45  ;;  %v377_v45 = vsub.s32 0, %v2364_v57 }
  0x58   : > { %540 = vmatprep.mubr.f32.mxu0 %v2095_v0  ;;  %1782 = vmatprep.subr.bf16.mxu1 %v1781_v55 }
  0x5b   : > { %1459 = vmatmul.mubr.msk.f32.gmra.mrb[14].mxu0 %vm385_vm0, %v356_v26 }
  0x5c   : > { %546 = vmatprep.mubr.f32.mxu0 %v2095_v0 }
  0x5f   : > { %1460 = vmatmul.mubr.msk.f32.gmra.mrb[16].mxu0 %vm385_vm0, %v357_v27 }
  0x60   : > { %552 = vmatprep.mubr.f32.mxu0 %v2095_v0 }
  0x63   : > { %1461 = vmatmul.mubr.msk.f32.gmra.mrb[18].mxu0 %vm385_vm0, %v358_v28 }
  0x64   : > { %558 = vmatprep.mubr.f32.mxu0 %v2095_v0 }
  0x67   : > { %1462 = vmatmul.mubr.msk.f32.gmra.mrb[20].mxu0 %vm385_vm0, %v359_v29 }
  0x68   : > { %564 = vmatprep.mubr.f32.mxu0 %v2095_v0 }
  0x6b   : > { %1463 = vmatmul.mubr.msk.f32.gmra.mrb[22].mxu0 %vm385_vm0, %v360_v30  ;;  %v1785_v30 = vpack.c.bf16 %v926_v24, %v925_v23  ;;  %v935_v24 = vld [vmem:[%s2880_s5 + $0x60] sm:$0xff] }
  0x6c   : > { %570 = vmatprep.mubr.f32.mxu0 %v2095_v0 }
  0x6f   : > { %1464 = vmatmul.mubr.msk.f32.gmra.mrb[24].mxu0 %vm385_vm0, %v361_v31 }
  0x70   : > { %576 = vmatprep.mubr.f32.mxu0 %v2095_v0 }
  0x73   : > { %1465 = vmatmul.mubr.msk.f32.gmra.mrb[26].mxu0 %vm385_vm0, %v362_v32 }
  0x74   : > { %582 = vmatprep.mubr.f32.mxu0 %v2095_v0 }
  0x77   : > { %1466 = vmatmul.mubr.msk.f32.gmra.mrb[28].mxu0 %vm385_vm0, %v363_v33 }
  0x78   : > { %588 = vmatprep.mubr.f32.mxu0 %v2095_v0 }
  0x7b   : > { %1467 = vmatmul.mubr.msk.f32.gmra.mrb[30].mxu0 %vm385_vm0, %v364_v34  ;;  %v927_v34 = vld [vmem:[%s2880_s5 + $0x20] sm:$0xff] }
  0x7c   : > { %v1789_v41 = vpack.c.bf16 %v928_v35, %v927_v34 }
 0x112   : > { %v2375_v61 = vpop.f32.mrb[0].mxu0 }
 0x113   : > { %v502_v62 = vpop.f32.mrb[1].mxu0 }
 0x114   : > { %v503_v63 = vadd.f32 %v502_v62, %v2373_v60 }
 0x116   : > { %v628_v0 = vmul.f32 0.70710677, %v503_v63  ;;  %v2378_v1 = vpop.f32.mrb[2].mxu0  ;;  %v596_v15 = vmul.f32 0.5, %v503_v63 }
 0x117   : > { %v508_v2 = vpop.f32.mrb[3].mxu0 }
 0x118   : > { %1916 = verf.f32 %v628_v0  ;;  %v509_v3 = vadd.f32 %v508_v2, %v2373_v60 }
 0x11a   : > { %v630_v4 = vmul.f32 0.70710677, %v509_v3  ;;  %v2381_v5 = vpop.f32.mrb[4].mxu0  ;;  %v598_v25 = vmul.f32 0.5, %v509_v3 }
 0x11b   : > { %v514_v6 = vpop.f32.mrb[5].mxu0 }
 0x11c   : > { %1918 = verf.f32 %v630_v4  ;;  %v515_v7 = vadd.f32 %v514_v6, %v2373_v60  ;;  %v1797_v4 = vpack.c.bf16 %v932_v58, %v931_v56  ;;  %v2482_v58 = vrot.slane %v2370_v59, %v377_v45 }
 0x11e   : > { %v632_v8 = vmul.f32 0.70710677, %v515_v7  ;;  %v2384_v9 = vpop.f32.mrb[6].mxu0  ;;  %v600_v36 = vmul.f32 0.5, %v515_v7  ;;  %v2492_v59 = vadd.f32 %v2375_v61, %v2482_v58 }
 0x11f   : > { %v520_v10 = vpop.f32.mrb[7].mxu0 }
 0x120   : > { %1920 = verf.f32 %v632_v8  ;;  %v521_v11 = vadd.f32 %v520_v10, %v2373_v60  ;;  %v933_v10 = vld [vmem:[%s2880_s5 + $0x50] sm:$0xff]  ;;  %v627_v61 = vmul.f32 0.70710677, %v2492_v59 }
 0x122   : > { %v1917_v12 = vpop.eup %1916  ;;  %v634_v13 = vmul.f32 0.70710677, %v521_v11  ;;  %v2387_v14 = vpop.f32.mrb[8].mxu0  ;;  %v602_v47 = vmul.f32 0.5, %v521_v11  ;;  %v934_v11 = vld [vmem:[%s2880_s5 + $0x58] sm:$0xff] }
 0x123   : > { %v526_v16 = vpop.f32.mrb[9].mxu0  ;;  %v692_v17 = vadd.f32 1.0, %v1917_v12 }
 0x124   : > { %1922 = verf.f32 %v634_v13  ;;  %v527_v18 = vadd.f32 %v526_v16, %v2373_v60 }
 0x125   : > { %v2390_v19 = vmul.f32 %v692_v17, %v596_v15 }
 0x126   : > { %v1919_v20 = vpop.eup %1918  ;;  %v636_v21 = vmul.f32 0.70710677, %v527_v18  ;;  %v2392_v22 = vpop.f32.mrb[10].mxu0  ;;  %v604_v62 = vmul.f32 0.5, %v527_v18  ;;  %v1801_v18 = vpack.c.bf16 %v934_v11, %v933_v10 }
 0x127   : > { %v694_v26 = vadd.f32 1.0, %v1919_v20  ;;  %v532_v27 = vpop.f32.mrb[11].mxu0  ;;  %1605 = vmatprep.mubr.f32.mxu1 %v2390_v19 }
 0x128   : > { %1924 = verf.f32 %v636_v21  ;;  %v533_v28 = vadd.f32 %v532_v27, %v2373_v60 }
 0x129   : > { %v2402_v29 = vmul.f32 %v694_v26, %v598_v25  ;;  %v936_v25 = vld [vmem:[%s2880_s5 + $0x68] sm:$0xff] }
 0x12a   : > { %v1921_v31 = vpop.eup %1920  ;;  %v638_v32 = vmul.f32 0.70710677, %v533_v28  ;;  %v2404_v33 = vpop.f32.mrb[12].mxu0  ;;  %v606_v12 = vmul.f32 0.5, %v533_v28 }
 0x12b   : > { %v696_v37 = vadd.f32 1.0, %v1921_v31  ;;  %v538_v38 = vpop.f32.mrb[13].mxu0  ;;  %1606 = vmatmul.mubr.f32.vlgmr.msra.gmra.mrb[0].mxu1 %v2402_v29 }
 0x12c   : > { %1926 = verf.f32 %v638_v32  ;;  %v539_v39 = vadd.f32 %v538_v38, %v2373_v60  ;;  %1784 = vmatpush3.bf16.msra.mxu1 %v1781_v55  ;;  %v1805_v32 = vpack.c.bf16 %v936_v25, %v935_v24  ;;  %v938_v38 = vld [vmem:[%s2880_s5 + $0x78] sm:$0xff]  ;;  %v2507_v24 = vadd.f32 %v2381_v5, %v2482_v58 }
 0x12d   : > { %v2414_v40 = vmul.f32 %v696_v37, %v600_v36  ;;  %1786 = vmatprep.subr.bf16.mxu1 %v1785_v30  ;;  %v937_v37 = vld [vmem:[%s2880_s5 + $0x70] sm:$0xff] }
 0x12e   : > { %v1923_v42 = vpop.eup %1922  ;;  %v640_v43 = vmul.f32 0.70710677, %v539_v39  ;;  %v2416_v44 = vpop.f32.mrb[14].mxu0  ;;  %v608_v26 = vmul.f32 0.5, %v539_v39 }
 0x12f   : > { %v698_v48 = vadd.f32 1.0, %v1923_v42  ;;  %v544_v49 = vpop.f32.mrb[15].mxu0  ;;  %1608 = vmatprep.mubr.f32.mxu1 %v2414_v40 }
 0x130   : > { %1928 = verf.f32 %v640_v43  ;;  %v545_v50 = vadd.f32 %v544_v49, %v2373_v60  ;;  %1788 = vmatpush3.bf16.msra.mxu1 %v1785_v30 }
 0x131   : > { %v2426_v51 = vmul.f32 %v698_v48, %v602_v47  ;;  %1790 = vmatprep.subr.bf16.mxu1 %v1789_v41  ;;  %v1809_v47 = vpack.c.bf16 %v938_v38, %v937_v37  ;;  %v631_v37 = vmul.f32 0.70710677, %v2507_v24  ;;  %v2523_v38 = vadd.f32 %v2387_v14, %v2482_v58 }
 0x132   : > { %v1925_v53 = vpop.eup %1924  ;;  %v642_v54 = vmul.f32 0.70710677, %v545_v50  ;;  %v2428_v55 = vpop.f32.mrb[16].mxu0  ;;  %v610_v39 = vmul.f32 0.5, %v545_v50 }
 0x133   : > { %v700_v63 = vadd.f32 1.0, %v1925_v53  ;;  %v550_v0 = vpop.f32.mrb[17].mxu0  ;;  %1609 = vmatmul.mubr.f32.gmra.mrb[2].mxu1 %v2426_v51  ;;  %v635_v14 = vmul.f32 0.70710677, %v2523_v38 }
 0x134   : > { %1930 = verf.f32 %v642_v54  ;;  %v551_v2 = vadd.f32 %v550_v0, %v2373_v60  ;;  %1792 = vmatpush3.bf16.msra.mxu1 %v1789_v41 }
 0x135   : > { %v2438_v3 = vmul.f32 %v700_v63, %v604_v62  ;;  %1794 = vmatprep.subr.bf16.mxu1 %v1793_v52 }
 0x136   : > { %v1927_v6 = vpop.eup %1926  ;;  %v644_v7 = vmul.f32 0.70710677, %v551_v2  ;;  %v2440_v8 = vpop.f32.mrb[18].mxu0  ;;  %v612_v53 = vmul.f32 0.5, %v551_v2 }
 0x137   : > { %v702_v13 = vadd.f32 1.0, %v1927_v6  ;;  %v556_v15 = vpop.f32.mrb[19].mxu0  ;;  %1611 = vmatprep.mubr.f32.mxu1 %v2438_v3 }
 0x138   : > { %1932 = verf.f32 %v644_v7  ;;  %v557_v16 = vadd.f32 %v556_v15, %v2373_v60  ;;  %1796 = vmatpush3.bf16.msra.mxu1 %v1793_v52  ;;  %v2500_v15 = vadd.f32 %v2378_v1, %v2482_v58 }
 0x139   : > { %v2450_v17 = vmul.f32 %v702_v13, %v606_v12  ;;  %1798 = vmatprep.subr.bf16.mxu1 %v1797_v4 }
 0x13a   : > { %v1929_v20 = vpop.eup %1928  ;;  %v646_v21 = vmul.f32 0.70710677, %v557_v16  ;;  %v2452_v23 = vpop.f32.mrb[20].mxu0 }
 0x13b   : > { %v704_v27 = vadd.f32 1.0, %v1929_v20  ;;  %v562_v28 = vpop.f32.mrb[21].mxu0  ;;  %1612 = vmatmul.mubr.f32.gmra.mrb[4].mxu1 %v2450_v17 }
 0x13c   : > { %1934 = verf.f32 %v646_v21  ;;  %v563_v30 = vadd.f32 %v562_v28, %v2373_v60  ;;  %1800 = vmatpush3.bf16.msra.mxu1 %v1797_v4  ;;  %v614_v4 = vmul.f32 0.5, %v557_v16  ;;  %v629_v28 = vmul.f32 0.70710677, %v2500_v15 }
 0x13d   : > { %v2462_v31 = vmul.f32 %v704_v27, %v608_v26  ;;  %1802 = vmatprep.subr.bf16.mxu1 %v1801_v18 }
 0x13e   : > { %v1931_v34 = vpop.eup %1930  ;;  %v648_v35 = vmul.f32 0.70710677, %v563_v30  ;;  %v2464_v36 = vpop.f32.mrb[22].mxu0  ;;  %v616_v16 = vmul.f32 0.5, %v563_v30 }
 0x13f   : > { %v706_v41 = vadd.f32 1.0, %v1931_v34  ;;  %v568_v42 = vpop.f32.mrb[23].mxu0  ;;  %1614 = vmatprep.mubr.f32.mxu1 %v2462_v31 }
 0x140   : > { %1936 = verf.f32 %v648_v35  ;;  %v569_v43 = vadd.f32 %v568_v42, %v2373_v60  ;;  %1804 = vmatpush3.bf16.msra.mxu1 %v1801_v18  ;;  %v2517_v35 = vadd.f32 %v2384_v9, %v2482_v58 }
 0x141   : > { %v2475_v46 = vmul.f32 %v706_v41, %v610_v39  ;;  %1806 = vmatprep.subr.bf16.mxu1 %v1805_v32 }
 0x142   : > { %v1933_v48 = vpop.eup %1932  ;;  %v650_v49 = vmul.f32 0.70710677, %v569_v43  ;;  %v2477_v52 = vpop.f32.mrb[24].mxu0  ;;  %v618_v30 = vmul.f32 0.5, %v569_v43  ;;  %v633_v9 = vmul.f32 0.70710677, %v2517_v35 }
 0x143   : > { %v708_v50 = vadd.f32 1.0, %v1933_v48  ;;  %v574_v54 = vpop.f32.mrb[25].mxu0  ;;  %1615 = vmatmul.mubr.f32.gmra.mrb[6].mxu1 %v2475_v46 }
 0x144   : > { %1938 = verf.f32 %v650_v49  ;;  %v575_v56 = vadd.f32 %v574_v54, %v2373_v60  ;;  %1808 = vmatpush3.bf16.msra.mxu1 %v1805_v32 }
 0x145   : > { %v2484_v57 = vmul.f32 %v708_v50, %v612_v53  ;;  %1810 = vmatprep.subr.bf16.mxu1 %v1809_v47 }
 0x146   : > { %v1935_v62 = vpop.eup %1934  ;;  %v652_v63 = vmul.f32 0.70710677, %v575_v56  ;;  %v2486_v0 = vpop.f32.mrb[26].mxu0  ;;  %v620_v43 = vmul.f32 0.5, %v575_v56 }
 0x147   : > { %v710_v2 = vadd.f32 1.0, %v1935_v62  ;;  %v580_v6 = vpop.f32.mrb[27].mxu0  ;;  %1617 = vmatprep.mubr.f32.mxu1 %v2484_v57 }
 0x148   : > { %1940 = verf.f32 %v652_v63  ;;  %v581_v7 = vadd.f32 %v580_v6, %v2373_v60  ;;  %1812 = vmatpush3.bf16.msra.mxu1 %v1809_v47  ;;  %v2536_v47 = vadd.f32 %v2404_v33, %v2482_v58  ;;  %v2549_v33 = vadd.f32 %v2428_v55, %v2482_v58 }
 0x149   : > { %v2494_v10 = vmul.f32 %v710_v2, %v614_v4 }
 0x14a   : > { %v1937_v11 = vpop.eup %1936  ;;  %v654_v12 = vmul.f32 0.70710677, %v581_v7  ;;  %v2496_v13 = vpop.f32.mrb[28].mxu0  ;;  %v622_v53 = vmul.f32 0.5, %v581_v7  ;;  %v639_v56 = vmul.f32 0.70710677, %v2536_v47 }
 0x14b   : > { %v712_v18 = vadd.f32 1.0, %v1937_v11  ;;  %v586_v20 = vpop.f32.mrb[29].mxu0  ;;  %1618 = vmatmul.mubr.f32.gmra.mrb[8].mxu1 %v2494_v10  ;;  %v643_v55 = vmul.f32 0.70710677, %v2549_v33 }
 0x14c   : > { %1942 = verf.f32 %v654_v12  ;;  %v587_v21 = vadd.f32 %v586_v20, %v2373_v60  ;;  %v2562_v12 = vadd.f32 %v2452_v23, %v2482_v58 }
 0x14d   : > { %v2509_v25 = vmul.f32 %v712_v18, %v616_v16 }
 0x14e   : > { %v1939_v26 = vpop.eup %1938  ;;  %v656_v27 = vmul.f32 0.70710677, %v587_v21  ;;  %v2511_v1 = vpop.f32.mrb[30].mxu0  ;;  %v624_v2 = vmul.f32 0.5, %v587_v21  ;;  %v647_v23 = vmul.f32 0.70710677, %v2562_v12 }
 0x14f   : > { %v714_v32 = vadd.f32 1.0, %v1939_v26  ;;  %v592_v34 = vpop.f32.mrb[31].mxu0  ;;  %1620 = vmatprep.mubr.f32.mxu1 %v2509_v25 }
 0x150   : > { %1944 = verf.f32 %v656_v27  ;;  %v593_v5 = vadd.f32 %v592_v34, %v2373_v60  ;;  %v2531_v60 = vadd.f32 %v2392_v22, %v2482_v58  ;;  %v2544_v22 = vadd.f32 %v2416_v44, %v2482_v58 }
 0x151   : > { %1946 = verf.f32 %v627_v61  ;;  %v2525_v39 = vmul.f32 %v714_v32, %v618_v30  ;;  %v2557_v44 = vadd.f32 %v2440_v8, %v2482_v58  ;;  %v595_v61 = vmul.f32 0.5, %v2492_v59 }
 0x152   : > { %v1941_v41 = vpop.eup %1940  ;;  %v658_v42 = vmul.f32 0.70710677, %v593_v5  ;;  %1948 = verf.f32 %v629_v28  ;;  %v637_v54 = vmul.f32 0.70710677, %v2531_v60  ;;  %v641_v7 = vmul.f32 0.70710677, %v2544_v22 }
 0x153   : > { %v716_v45 = vadd.f32 1.0, %v1941_v41  ;;  %1621 = vmatmul.mubr.f32.gmra.mrb[10].mxu1 %v2525_v39  ;;  %v626_v26 = vmul.f32 0.5, %v593_v5  ;;  %v645_v28 = vmul.f32 0.70710677, %v2557_v44  ;;  %v2571_v30 = vadd.f32 %v2464_v36, %v2482_v58 }
 0x154   : > { %1950 = verf.f32 %v658_v42  ;;  %v2576_v32 = vadd.f32 %v2477_v52, %v2482_v58  ;;  %v597_v5 = vmul.f32 0.5, %v2500_v15  ;;  %v2590_v52 = vadd.f32 %v2486_v0, %v2482_v58 }
 0x155   : > { %1952 = verf.f32 %v631_v37  ;;  %v2538_v48 = vmul.f32 %v716_v45, %v620_v43  ;;  %v599_v43 = vmul.f32 0.5, %v2507_v24  ;;  %v649_v45 = vmul.f32 0.70710677, %v2571_v30 }
 0x156   : > { %v1943_v49 = vpop.eup %1942  ;;  %1954 = verf.f32 %v633_v9  ;;  %v651_v9 = vmul.f32 0.70710677, %v2576_v32  ;;  %v2596_v24 = vadd.f32 %v2496_v13, %v2482_v58  ;;  %v603_v0 = vmul.f32 0.5, %v2523_v38 }
 0x157   : > { %v718_v50 = vadd.f32 1.0, %v1943_v49  ;;  %1623 = vmatprep.mubr.f32.mxu1 %v2538_v48  ;;  %1956 = verf.f32 %v635_v14  ;;  %v605_v38 = vmul.f32 0.5, %v2531_v60  ;;  %v611_v60 = vmul.f32 0.5, %v2549_v33 }
 0x158   : > { %1958 = verf.f32 %v637_v54  ;;  %v601_v54 = vmul.f32 0.5, %v2517_v35 }
 0x159   : > { %v2551_v62 = vmul.f32 %v718_v50, %v622_v53  ;;  %1960 = verf.f32 %v639_v56  ;;  %v653_v56 = vmul.f32 0.70710677, %v2590_v52 }
 0x15a   : > { %v1945_v63 = vpop.eup %1944  ;;  %1962 = verf.f32 %v641_v7 }
 0x15b   : > { %v1947_v4 = vpop.eup %1946  ;;  %v720_v6 = vadd.f32 1.0, %v1945_v63  ;;  %1624 = vmatmul.mubr.f32.gmra.mrb[12].mxu1 %v2551_v62  ;;  %1964 = verf.f32 %v643_v55  ;;  %v591_v63 = vadd.f32 %v2511_v1, %v2482_v58  ;;  %v607_v55 = vmul.f32 0.5, %v2536_v47 }
 0x15c   : > { %v1949_v11 = vpop.eup %1948  ;;  %v691_v20 = vadd.f32 1.0, %v1947_v4  ;;  %1966 = verf.f32 %v645_v28  ;;  %v655_v4 = vmul.f32 0.70710677, %v2596_v24 }
 0x15d   : > { %v2564_v16 = vmul.f32 %v720_v6, %v624_v2  ;;  %v693_v8 = vadd.f32 1.0, %v1949_v11  ;;  %1968 = verf.f32 %v647_v23  ;;  %v657_v58 = vmul.f32 0.70710677, %v591_v63 }
 0x15e   : > { %v1951_v18 = vpop.eup %1950  ;;  %v2581_v41 = vmul.f32 %v691_v20, %v595_v61  ;;  %1970 = verf.f32 %v649_v45 }
 0x15f   : > { %v1953_v21 = vpop.eup %1952  ;;  %v722_v27 = vadd.f32 1.0, %v1951_v18  ;;  %1626 = vmatprep.mubr.f32.mxu1 %v2564_v16  ;;  %v2585_v36 = vmul.f32 %v693_v8, %v597_v5  ;;  %1972 = verf.f32 %v651_v9 }
 0x160   : > { %v1955_v34 = vpop.eup %1954  ;;  %v695_v37 = vadd.f32 1.0, %v1953_v21  ;;  %1974 = verf.f32 %v653_v56  ;;  %v621_v56 = vmul.f32 0.5, %v2590_v52  ;;  %v1139_v52 = vld [vmem:[#allocation2] sm:$0xff] }
 0x161   : > { %v2578_v59 = vmul.f32 %v722_v27, %v626_v26  ;;  %v1957_v42 = vpop.eup %1956  ;;  %v697_v15 = vadd.f32 1.0, %v1955_v34  ;;  %1976 = verf.f32 %v655_v4  ;;  %v609_v27 = vmul.f32 0.5, %v2544_v22 }
 0x162   : > { %v1959_v14 = vpop.eup %1958  ;;  %v699_v49 = vadd.f32 1.0, %v1957_v42  ;;  %v2598_v53 = vmul.f32 %v695_v37, %v599_v43  ;;  %1978 = verf.f32 %v657_v58  ;;  %v613_v37 = vmul.f32 0.5, %v2557_v44 }
 0x163   : > { %1627 = vmatmul.mubr.f32.gmra.mrb[14].mxu1 %v2578_v59  ;;  %v1961_v50 = vpop.eup %1960  ;;  %v701_v13 = vadd.f32 1.0, %v1959_v14  ;;  %v2608_v2 = vmul.f32 %v697_v15, %v601_v54  ;;  %v615_v22 = vmul.f32 0.5, %v2562_v12  ;;  %v617_v14 = vmul.f32 0.5, %v2571_v30 }
 0x164   : > { %1661 = vmatprep.mubr.f32.mxu1 %v2581_v41  ;;  %v1963_v6 = vpop.eup %1962  ;;  %v703_v35 = vadd.f32 1.0, %v1961_v50  ;;  %v2610_v7 = vmul.f32 %v699_v49, %v603_v0  ;;  %v619_v44 = vmul.f32 0.5, %v2576_v32 }
 0x165   : > { %v1965_v11 = vpop.eup %1964  ;;  %v705_v1 = vadd.f32 1.0, %v1963_v6  ;;  %v2616_v18 = vmul.f32 %v701_v13, %v605_v38  ;;  %v623_v13 = vmul.f32 0.5, %v2596_v24  ;;  %v625_v6 = vmul.f32 0.5, %v591_v63  ;;  %v1141_v24 = vld [vmem:[#allocation2 + $0x10] sm:$0xff]  ;;  %v1143_v63 = vld [vmem:[#allocation2 + $0x20] sm:$0xff] }
 0x166   : > { %v1967_v20 = vpop.eup %1966  ;;  %v707_v21 = vadd.f32 1.0, %v1965_v11  ;;  %v2618_v61 = vmul.f32 %v703_v35, %v607_v55  ;;  %v1140_v11 = vld [vmem:[#allocation2 + $0x8] sm:$0xff]  ;;  %v1142_v55 = vld [vmem:[#allocation2 + $0x18] sm:$0xff] }
 0x167   : > { %1662 = vmatmul.mubr.f32.vlgmr.msra.gmra.mrb[16].mxu1 %v2585_v36  ;;  %v1969_v26 = vpop.eup %1968  ;;  %v709_v47 = vadd.f32 1.0, %v1967_v20  ;;  %v2624_v8 = vmul.f32 %v705_v1, %v609_v27  ;;  %v1813_v38 = vpack.c.bf16 %v1140_v11, %v1139_v52  ;;  %v1817_v58 = vpack.c.bf16 %v1142_v55, %v1141_v24  ;;  %v1144_v1 = vld [vmem:[#allocation2 + $0x28] sm:$0xff] }
 0x168   : > { %1664 = vmatprep.mubr.f32.mxu1 %v2598_v53  ;;  %v1971_v28 = vpop.eup %1970  ;;  %v711_v23 = vadd.f32 1.0, %v1969_v26  ;;  %v2626_v34 = vmul.f32 %v707_v21, %v611_v60  ;;  %v1821_v20 = vpack.c.bf16 %v1144_v1, %v1143_v63  ;;  %v1145_v21 = vld [vmem:[#allocation2 + $0x30] sm:$0xff]  ;;  %v1146_v26 = vld [vmem:[#allocation2 + $0x38] sm:$0xff]  ;;  %v1147_v60 = vld [vmem:[#allocation2 + $0x40] sm:$0xff] }
 0x169   : > { %v1973_v5 = vpop.eup %1972  ;;  %v713_v33 = vadd.f32 1.0, %v1971_v28  ;;  %v2632_v42 = vmul.f32 %v709_v47, %v613_v37  ;;  %1814 = vmatprep.subr.bf16.mxu0 %v1813_v38  ;;  %1845 = vmatprep.subr.bf16.mxu1 %v1813_v38  ;;  %v1825_v27 = vpack.c.bf16 %v1146_v26, %v1145_v21  ;;  %v1148_v47 = vld [vmem:[#allocation2 + $0x48] sm:$0xff]  ;;  %v2668_v63 = vld [vmem:[%s2879_s4] ss:$0 sm:$0xff] }
 0x16a   : > { %v1975_v43 = vpop.eup %1974  ;;  %v715_v45 = vadd.f32 1.0, %v1973_v5  ;;  %v2634_v15 = vmul.f32 %v711_v23, %v615_v22  ;;  %1816 = vmatpush3.bf16.msra.mxu0 %v1813_v38  ;;  %1853 = vmatpush3.bf16.msra.mxu1 %v1813_v38  ;;  %v1829_v28 = vpack.c.bf16 %v1148_v47, %v1147_v60  ;;  %v1149_v23 = vld [vmem:[#allocation2 + $0x50] sm:$0xff]  ;;  %v1150_v5 = vld [vmem:[#allocation2 + $0x58] sm:$0xff]  ;;  %v1151_v22 = vld [vmem:[#allocation2 + $0x60] sm:$0xff] }
 0x16b   : > { %1665 = vmatmul.mubr.f32.gmra.mrb[18].mxu1 %v2608_v2  ;;  %v1977_v9 = vpop.eup %1976  ;;  %v717_v49 = vadd.f32 1.0, %v1975_v43  ;;  %v2640_v12 = vmul.f32 %v713_v33, %v617_v14  ;;  %1818 = vmatprep.subr.bf16.mxu0 %v1817_v58  ;;  %v1833_v37 = vpack.c.bf16 %v1150_v5, %v1149_v23  ;;  %v1152_v33 = vld [vmem:[#allocation2 + $0x68] sm:$0xff]  ;;  %v2677_v21 = vld [vmem:[%s2881_s6] ss:$0 sm:$0xff] }
 0x16c   : > { %1667 = vmatprep.mubr.f32.mxu1 %v2610_v7  ;;  %v1979_v50 = vpop.eup %1978  ;;  %v719_v54 = vadd.f32 1.0, %v1977_v9  ;;  %v2642_v0 = vmul.f32 %v715_v45, %v619_v44  ;;  %1846 = vmatprep.subr.bf16.mxu1 %v1817_v58  ;;  %v1837_v43 = vpack.c.bf16 %v1152_v33, %v1151_v22  ;;  %v1153_v45 = vld [vmem:[#allocation2 + $0x70] sm:$0xff]  ;;  %v1154_v9 = vld [vmem:[#allocation2 + $0x78] sm:$0xff] }
 0x16d   : > { %v721_v30 = vadd.f32 1.0, %v1979_v50  ;;  %v2648_v4 = vmul.f32 %v717_v49, %v621_v56  ;;  %v1841_v14 = vpack.c.bf16 %v1154_v9, %v1153_v45 }
 0x16e   : > { %v2650_v32 = vmul.f32 %v719_v54, %v623_v13  ;;  %1820 = vmatpush3.bf16.msra.mxu0 %v1817_v58  ;;  %1854 = vmatpush3.bf16.msra.mxu1 %v1817_v58 }
 0x16f   : > { %1668 = vmatmul.mubr.f32.gmra.mrb[20].mxu1 %v2616_v18  ;;  %v2654_v35 = vmul.f32 %v721_v30, %v625_v6  ;;  %1822 = vmatprep.subr.bf16.mxu0 %v1821_v20 }
 0x170   : > { %1670 = vmatprep.mubr.f32.mxu1 %v2618_v61  ;;  %1847 = vmatprep.subr.bf16.mxu1 %v1821_v20 }
 0x172   : > { %1824 = vmatpush3.bf16.msra.mxu0 %v1821_v20  ;;  %1855 = vmatpush3.bf16.msra.mxu1 %v1821_v20 }
 0x173   : > { %1671 = vmatmul.mubr.f32.gmra.mrb[22].mxu1 %v2624_v8  ;;  %1826 = vmatprep.subr.bf16.mxu0 %v1825_v27 }
 0x174   : > { %1673 = vmatprep.mubr.f32.mxu1 %v2626_v34  ;;  %1848 = vmatprep.subr.bf16.mxu1 %v1825_v27 }
 0x176   : > { %1828 = vmatpush3.bf16.msra.mxu0 %v1825_v27  ;;  %1856 = vmatpush3.bf16.msra.mxu1 %v1825_v27 }
 0x177   : > { %1674 = vmatmul.mubr.f32.gmra.mrb[24].mxu1 %v2632_v42  ;;  %1830 = vmatprep.subr.bf16.mxu0 %v1829_v28 }
 0x178   : > { %1676 = vmatprep.mubr.f32.mxu1 %v2634_v15  ;;  %1849 = vmatprep.subr.bf16.mxu1 %v1829_v28 }
 0x17a   : > { %1832 = vmatpush3.bf16.msra.mxu0 %v1829_v28  ;;  %1857 = vmatpush3.bf16.msra.mxu1 %v1829_v28 }
 0x17b   : > { %1677 = vmatmul.mubr.f32.gmra.mrb[26].mxu1 %v2640_v12  ;;  %1834 = vmatprep.subr.bf16.mxu0 %v1833_v37 }
 0x17c   : > { %1679 = vmatprep.mubr.f32.mxu1 %v2642_v0  ;;  %1850 = vmatprep.subr.bf16.mxu1 %v1833_v37 }
 0x17e   : > { %1836 = vmatpush3.bf16.msra.mxu0 %v1833_v37  ;;  %1858 = vmatpush3.bf16.msra.mxu1 %v1833_v37 }
 0x17f   : > { %1680 = vmatmul.mubr.f32.gmra.mrb[28].mxu1 %v2648_v4  ;;  %1838 = vmatprep.subr.bf16.mxu0 %v1837_v43 }
 0x180   : > { %1682 = vmatprep.mubr.f32.mxu1 %v2650_v32  ;;  %1851 = vmatprep.subr.bf16.mxu1 %v1837_v43 }
 0x182   : > { %1840 = vmatpush3.bf16.msra.mxu0 %v1837_v43  ;;  %1859 = vmatpush3.bf16.msra.mxu1 %v1837_v43 }
 0x183   : > { %1683 = vmatmul.mubr.f32.gmra.mrb[30].mxu1 %v2654_v35  ;;  %1842 = vmatprep.subr.bf16.mxu0 %v1841_v14 }
 0x184   : > { %1852 = vmatprep.subr.bf16.mxu1 %v1841_v14 }
 0x186   : > { %1844 = vmatpush3.bf16.msra.mxu0 %v1841_v14  ;;  %1860 = vmatpush3.bf16.msra.mxu1 %v1841_v14 }
 0x1fe   : > { %v1607_v44 = vpop.f32.mrb[0].mxu1 }
 0x1ff   : > { %v844_v49 = vpop.f32.mrb[1].mxu1  ;;  %v850_v26 = vadd.f32 %v1607_v44, %v2668_v63 }
 0x200   : > { %v845_v27 = vadd.f32 %v2668_v63, %v844_v49 }
 0x201   : > { %v1092_v5 = vmul.f32 %v850_v26, %v2585_v36 }
 0x202   : > { %v1091_v33 = vmul.f32 %v845_v27, %v2581_v41 }
 0x206   : > { %v1610_v50 = vpop.f32.mrb[2].mxu1 }
 0x207   : > { %v854_v54 = vpop.f32.mrb[3].mxu1  ;;  %v860_v37 = vadd.f32 %v1610_v50, %v2668_v63 }
 0x208   : > { %v855_v43 = vadd.f32 %v2668_v63, %v854_v54 }
 0x209   : > { %v1094_v36 = vmul.f32 %v860_v37, %v2608_v2 }
 0x20a   : > { %v1093_v41 = vmul.f32 %v855_v43, %v2598_v53 }
 0x20e   : > { %v1613_v56 = vpop.f32.mrb[4].mxu1 }
 0x20f   : > { %v864_v13 = vpop.f32.mrb[5].mxu1  ;;  %v870_v50 = vadd.f32 %v1613_v56, %v2668_v63 }
 0x210   : > { %v865_v54 = vadd.f32 %v2668_v63, %v864_v13 }
 0x211   : > { %v1096_v56 = vmul.f32 %v870_v50, %v2616_v18 }
 0x212   : > { %v1095_v13 = vmul.f32 %v865_v54, %v2610_v7 }
 0x216   : > { %v1616_v30 = vpop.f32.mrb[6].mxu1 }
 0x217   : > { %v874_v6 = vpop.f32.mrb[7].mxu1 }
 0x21e   : > { %v1619_v52 = vpop.f32.mrb[8].mxu1 }
 0x21f   : > { %v884_v11 = vpop.f32.mrb[9].mxu1 }
 0x226   : > { %v2657_v38 = vpop.f32.mrb[10].mxu1 }
 0x227   : > { %v2659_v24 = vpop.f32.mrb[11].mxu1 }
 0x22e   : > { %v2661_v55 = vpop.f32.mrb[12].mxu1 }
 0x22f   : > { %v2663_v58 = vpop.f32.mrb[13].mxu1 }
 0x236   : > { %v2670_v1 = vpop.f32.mrb[14].mxu1 }
 0x237   : > { %v2672_v20 = vpop.f32.mrb[15].mxu1 }
 0x23a   : > { %v1663_v60 = vpop.f32.mrb[16].mxu1 }
 0x23b   : > { %v1018_v47 = vadd.f32 %v1663_v60, %v2677_v21  ;;  %v1012_v28 = vpop.f32.mrb[17].mxu1 }
 0x23c   : > { %v1013_v23 = vadd.f32 %v2677_v21, %v1012_v28 }
 0x23d   : > { %v1108_v22 = vmul.f32 %v1018_v47, %v2402_v29 }
 0x23e   : > { %v1107_v45 = vmul.f32 %v1013_v23, %v2390_v19  ;;  %v1666_v9 = vpop.f32.mrb[18].mxu1 }
 0x23f   : > { %v1124_v14 = vadd.f32 %v1108_v22, %v1092_v5  ;;  %v1028_v44 = vadd.f32 %v1666_v9, %v2677_v21  ;;  %v1022_v49 = vpop.f32.mrb[19].mxu1 }
 0x240   : > { %v1023_v60 = vadd.f32 %v2677_v21, %v1022_v49  ;;  %v1123_v28 = vadd.f32 %v1107_v45, %v1091_v33 }
 0x241   : > { %v1110_v29 = vmul.f32 %v1028_v44, %v2426_v51  ;;  %v880_v51 = vadd.f32 %v1616_v30, %v2668_v63 }
 0x242   : > { %v1109_v19 = vmul.f32 %v1023_v60, %v2414_v40  ;;  %v1669_v26 = vpop.f32.mrb[20].mxu1  ;;  %1717 = vmatprep.mubr.f32.mxu0 %v1123_v28  ;;  %v875_v40 = vadd.f32 %v2668_v63, %v874_v6 }
 0x243   : > { %v1038_v27 = vadd.f32 %v1669_v26, %v2677_v21  ;;  %v1032_v47 = vpop.f32.mrb[21].mxu1  ;;  %1718 = vmatmul.mubr.f32.vlgmr.msra.gmra.mrb[32].mxu0 %v1124_v14  ;;  %v1126_v23 = vadd.f32 %v1110_v29, %v1094_v36  ;;  %v1098_v30 = vmul.f32 %v880_v51, %v2624_v8 }
 0x244   : > { %v1033_v5 = vadd.f32 %v2677_v21, %v1032_v47  ;;  %v1125_v2 = vadd.f32 %v1109_v19, %v1093_v41  ;;  %v1097_v6 = vmul.f32 %v875_v40, %v2618_v61 }
 0x245   : > { %v1112_v53 = vmul.f32 %v1038_v27, %v2450_v17  ;;  %v890_v17 = vadd.f32 %v1619_v52, %v2668_v63 }
 0x246   : > { %v1111_v37 = vmul.f32 %v1033_v5, %v2438_v3  ;;  %v1672_v22 = vpop.f32.mrb[22].mxu1  ;;  %1720 = vmatprep.mubr.f32.mxu0 %v1125_v2  ;;  %v885_v3 = vadd.f32 %v2668_v63, %v884_v11 }
 0x247   : > { %v1048_v33 = vadd.f32 %v1672_v22, %v2677_v21  ;;  %v1042_v43 = vpop.f32.mrb[23].mxu1  ;;  %1721 = vmatmul.mubr.f32.gmra.mrb[34].mxu0 %v1126_v23  ;;  %v1128_v45 = vadd.f32 %v1112_v53, %v1096_v56  ;;  %v1100_v52 = vmul.f32 %v890_v17, %v2632_v42 }
 0x248   : > { %v1043_v9 = vadd.f32 %v2677_v21, %v1042_v43  ;;  %v1127_v18 = vadd.f32 %v1111_v37, %v1095_v13  ;;  %v1099_v11 = vmul.f32 %v885_v3, %v2626_v34  ;;  %v1981_v43 = vld [vmem:[%s2261_s25] sm:$0xff] }
 0x249   : > { %v1114_v7 = vmul.f32 %v1048_v33, %v2475_v46  ;;  %v900_v46 = vadd.f32 %v2657_v38, %v2668_v63 }
 0x24a   : > { %v1113_v14 = vmul.f32 %v1043_v9, %v2462_v31  ;;  %v1675_v44 = vpop.f32.mrb[24].mxu1  ;;  %1723 = vmatprep.mubr.f32.mxu0 %v1127_v18  ;;  %v895_v31 = vadd.f32 %v2668_v63, %v2659_v24 }
 0x24b   : > { %v1058_v49 = vadd.f32 %v1675_v44, %v2677_v21  ;;  %v1052_v60 = vpop.f32.mrb[25].mxu1  ;;  %1724 = vmatmul.mubr.f32.gmra.mrb[36].mxu0 %v1128_v45  ;;  %v1130_v28 = vadd.f32 %v1114_v7, %v1098_v30  ;;  %v1102_v38 = vmul.f32 %v900_v46, %v2640_v12  ;;  %v1307_v45 = vsel %vm385_vm0, %v1981_v43, 0.0  ;;  %v1982_v7 = vld [vmem:[%s2261_s25 + $0x18] sm:$0xff]  ;;  %v1983_v44 = vld [vmem:[%s2261_s25 + $0x10] sm:$0xff] }
 0x24c   : > { %v1053_v36 = vadd.f32 %v2677_v21, %v1052_v60  ;;  %v1129_v8 = vadd.f32 %v1113_v14, %v1097_v6  ;;  %v1101_v24 = vmul.f32 %v895_v31, %v2634_v15  ;;  %v1310_v6 = vsel %vm385_vm0, %v1982_v7, 0.0  ;;  %v1985_v31 = vld [vmem:[%s2261_s25 + $0x20] sm:$0xff] }
 0x24d   : > { %v1116_v61 = vmul.f32 %v1058_v49, %v2494_v10  ;;  %v910_v10 = vadd.f32 %v2661_v55, %v2668_v63  ;;  %v1309_v49 = vsel %vm385_vm0, %v1983_v44, 0.0 }
 0x24e   : > { %v1115_v50 = vmul.f32 %v1053_v36, %v2484_v57  ;;  %v1678_v29 = vpop.f32.mrb[26].mxu1  ;;  %1726 = vmatprep.mubr.f32.mxu0 %v1129_v8  ;;  %v905_v57 = vadd.f32 %v2668_v63, %v2663_v58 }
 0x24f   : > { %v1068_v41 = vadd.f32 %v1678_v29, %v2677_v21  ;;  %v1062_v54 = vpop.f32.mrb[27].mxu1  ;;  %1727 = vmatmul.mubr.f32.gmra.mrb[38].mxu0 %v1130_v28  ;;  %v1132_v19 = vadd.f32 %v1116_v61, %v1100_v52  ;;  %v1104_v55 = vmul.f32 %v910_v10, %v2648_v4  ;;  %v1984_v52 = vld [vmem:[%s2261_s25 + $0x28] sm:$0xff] }
 0x250   : > { %v1063_v42 = vadd.f32 %v2677_v21, %v1062_v54  ;;  %v1131_v26 = vadd.f32 %v1115_v50, %v1099_v11  ;;  %v1103_v58 = vmul.f32 %v905_v57, %v2642_v0  ;;  %v1312_v46 = vsel %vm385_vm0, %v1984_v52, 0.0 }
 0x251   : > { %v1118_v34 = vmul.f32 %v1068_v41, %v2525_v39  ;;  %v920_v39 = vadd.f32 %v2670_v1, %v2668_v63  ;;  %v1311_v50 = vsel %vm385_vm0, %v1985_v31, 0.0 }
 0x252   : > { %v1117_v27 = vmul.f32 %v1063_v42, %v2509_v25  ;;  %v1681_v47 = vpop.f32.mrb[28].mxu1  ;;  %1729 = vmatprep.mubr.f32.mxu0 %v1131_v26  ;;  %v915_v25 = vadd.f32 %v2668_v63, %v2672_v20  ;;  %v1986_v42 = vld [vmem:[%s2261_s25 + $0x38] sm:$0xff] }
 0x253   : > { %v1078_v23 = vadd.f32 %v1681_v47, %v2677_v21  ;;  %v1072_v5 = vpop.f32.mrb[29].mxu1  ;;  %1730 = vmatmul.mubr.f32.gmra.mrb[40].mxu0 %v1132_v19  ;;  %v1134_v2 = vadd.f32 %v1118_v34, %v1102_v38  ;;  %v1106_v0 = vmul.f32 %v920_v39, %v2654_v35  ;;  %v1314_v26 = vsel %vm385_vm0, %v1986_v42, 0.0  ;;  %v1987_v34 = vld [vmem:[%s2261_s25 + $0x30] sm:$0xff] }
 0x254   : > { %v1073_v12 = vadd.f32 %v2677_v21, %v1072_v5  ;;  %v1133_v56 = vadd.f32 %v1117_v27, %v1101_v24  ;;  %v1105_v63 = vmul.f32 %v915_v25, %v2650_v32  ;;  %v1980_v32 = vld [vmem:[%s2261_s25 + $0x8] sm:$0xff]  ;;  %v1313_v24 = vsel %vm385_vm0, %v1987_v34, 0.0 }
 0x255   : > { %v1120_v15 = vmul.f32 %v1078_v23, %v2551_v62  ;;  %v1988_v5 = vld [vmem:[%s2261_s25 + $0x48] sm:$0xff] }
 0x256   : > { %v1119_v51 = vmul.f32 %v1073_v12, %v2538_v48  ;;  %v1684_v53 = vpop.f32.mrb[30].mxu1  ;;  %1732 = vmatprep.mubr.f32.mxu0 %v1133_v56 }
 0x257   : > { %v1088_v13 = vadd.f32 %v1684_v53, %v2677_v21  ;;  %v1082_v40 = vpop.f32.mrb[31].mxu1  ;;  %1733 = vmatmul.mubr.f32.gmra.mrb[42].mxu0 %v1134_v2  ;;  %v1136_v4 = vadd.f32 %v1120_v15, %v1104_v55  ;;  %v1316_v2 = vsel %vm385_vm0, %v1988_v5, 0.0  ;;  %v1989_v55 = vld [vmem:[%s2261_s25 + $0x40] sm:$0xff]  ;;  %v1990_v53 = vld [vmem:[%s2261_s25 + $0x58] sm:$0xff] }
 0x258   : > { %v1083_v1 = vadd.f32 %v2677_v21, %v1082_v40  ;;  %v1135_v62 = vadd.f32 %v1119_v51, %v1103_v58  ;;  %v2753_v21 = vld [vmem:[%s2883_s8] ss:$0 sm:$0xff]  ;;  %v1315_v39 = vsel %vm385_vm0, %v1989_v55, 0.0 }
 0x259   : > { %v1122_v37 = vmul.f32 %v1088_v13, %v2578_v59  ;;  %v1318_v13 = vsel %vm385_vm0, %v1990_v53, 0.0 }
 0x25a   : > { %v1121_v48 = vmul.f32 %v1083_v1, %v2564_v16  ;;  %1735 = vmatprep.mubr.f32.mxu0 %v1135_v62  ;;  %v1308_v16 = vsel %vm385_vm0, %v1980_v32, 0.0  ;;  %v1991_v1 = vld [vmem:[%s2261_s25 + $0x50] sm:$0xff] }
 0x25b   : > { %v1138_v20 = vadd.f32 %v1122_v37, %v1106_v0  ;;  %1736 = vmatmul.mubr.f32.gmra.mrb[44].mxu0 %v1136_v4  ;;  %v1317_v62 = vsel %vm385_vm0, %v1991_v1, 0.0 }
 0x25c   : > { %v1137_v22 = vadd.f32 %v1121_v48, %v1105_v63 }
 0x25e   : > { %1738 = vmatprep.mubr.f32.mxu1 %v1137_v22 }
 0x25f   : > { %1739 = vmatmul.mubr.f32.vlgmr.msra.gmra.mrb[32].mxu1 %v1138_v20  ;;  %v1992_v20 = vld [vmem:[%s2261_s25 + $0x68] sm:$0xff] }
 0x260   : > { %v1320_v22 = vsel %vm385_vm0, %v1992_v20, 0.0 }
 0x316   : > { %v1719_v59 = vpop.f32.mrb[32].mxu0 }
 0x317   : > { %v1234_v35 = vadd.f32 %v1719_v59, %v2753_v21  ;;  %v1228_v33 = vpop.f32.mrb[33].mxu0 }
 0x318   : > { %v1229_v9 = vadd.f32 %v2753_v21, %v1228_v33 }
 0x319   : > { %v1324_v18 = vadd.f32 %v1308_v16, %v1234_v35  ;;  %v1993_v16 = vld [vmem:[%s2261_s25 + $0x60] sm:$0xff] }
 0x31a   : > { %v1323_v30 = vadd.f32 %v1307_v45, %v1229_v9  ;;  %v1722_v17 = vpop.f32.mrb[34].mxu0  ;;  %v1319_v35 = vsel %vm385_vm0, %v1993_v16, 0.0 }
 0x31b   : > { %1340 = vst [vmem:[%s2765_s16 + $0x8] sm:$0xff] %v1324_v18  ;;  %v1244_v3 = vadd.f32 %v1722_v17, %v2753_v21  ;;  %v1238_v14 = vpop.f32.mrb[35].mxu0  ;;  %v1994_v18 = vld [vmem:[%s2261_s25 + $0x78] sm:$0xff] }
 0x31c   : > { %1339 = vst [vmem:[%s2765_s16] sm:$0xff] %v1323_v30  ;;  %v1239_v60 = vadd.f32 %v2753_v21, %v1238_v14  ;;  %v1322_v30 = vsel %vm385_vm0, %v1994_v18, 0.0 }
 0x31d   : > { %v1326_v28 = vadd.f32 %v1310_v6, %v1244_v3  ;;  %v1995_v6 = vld [vmem:[%s2261_s25 + $0x70] sm:$0xff]  ;;  %s2024_s25 = scalar_lea.vmem %s2828_s22, 2048 }
 0x31e   : > { %v1325_v36 = vadd.f32 %v1309_v49, %v1239_v60  ;;  %v1725_v8 = vpop.f32.mrb[36].mxu0  ;;  %v1321_v3 = vsel %vm385_vm0, %v1995_v6, 0.0  ;;  %p2025_p6 = scmp.ne.s32.totalorder %s2828_s22, %s2024_s25  ;;  %p2032_p3 = scmp.lt.s32.totalorder %s2030_s29, %s2024_s25 }
 0x31f   : > { %1342 = vst [vmem:[%s2765_s16 + $0x18] sm:$0xff] %v1326_v28  ;;  %v1254_v61 = vadd.f32 %v1725_v8, %v2753_v21  ;;  %v1248_v11 = vpop.f32.mrb[37].mxu0 }
 0x320   : > { %1341 = vst [vmem:[%s2765_s16 + $0x10] sm:$0xff] %v1325_v36  ;;  %v1249_v29 = vadd.f32 %v2753_v21, %v1248_v11  ;;  %p2026_p10 = pnand %p2025_p6, %p2895_p9  ;;  %p2033_p4 = por %p2032_p3, %p2031_p2 }
 0x321   : > { %v1328_v41 = vadd.f32 %v1312_v46, %v1254_v61 }
 0x322   : > { %v1327_v54 = vadd.f32 %v1311_v50, %v1249_v29  ;;  %v1728_v19 = vpop.f32.mrb[38].mxu0  ;;  %p2027_p12 = pneg %p2026_p10 }
 0x323   : > { %1344 = vst [vmem:[%s2765_s16 + $0x28] sm:$0xff] %v1328_v41  ;;  %v1264_v38 = vadd.f32 %v1728_v19, %v2753_v21  ;;  %v1258_v10 = vpop.f32.mrb[39].mxu0 }
 0x324   : > { %1343 = vst [vmem:[%s2765_s16 + $0x20] sm:$0xff] %v1327_v54  ;;  %v1259_v57 = vadd.f32 %v2753_v21, %v1258_v10  ;;  %p2034_p7 = pnand %p2033_p4, %p2027_p12 }
 0x325   : > { %v1330_v27 = vadd.f32 %v1314_v26, %v1264_v38 }
 0x326   : > { %v1329_v47 = vadd.f32 %v1313_v24, %v1259_v57  ;;  %v1731_v23 = vpop.f32.mrb[40].mxu0 }
 0x327   : > { %1346 = vst [vmem:[%s2765_s16 + $0x38] sm:$0xff] %v1330_v27  ;;  %v1274_v12 = vadd.f32 %v1731_v23, %v2753_v21  ;;  %v1268_v56 = vpop.f32.mrb[41].mxu0 }
 0x328   : > { %1345 = vst [vmem:[%s2765_s16 + $0x30] sm:$0xff] %v1329_v47  ;;  %v1269_v15 = vadd.f32 %v2753_v21, %v1268_v56 }
 0x329   : > { %v1332_v58 = vadd.f32 %v1316_v2, %v1274_v12 }
 0x32a   : > { %v1331_v25 = vadd.f32 %v1315_v39, %v1269_v15  ;;  %v1734_v51 = vpop.f32.mrb[42].mxu0 }
 0x32b   : > { %1348 = vst [vmem:[%s2765_s16 + $0x48] sm:$0xff] %v1332_v58  ;;  %v1284_v40 = vadd.f32 %v1734_v51, %v2753_v21  ;;  %v1278_v4 = vpop.f32.mrb[43].mxu0 }
 0x32c   : > { %1347 = vst [vmem:[%s2765_s16 + $0x40] sm:$0xff] %v1331_v25  ;;  %v1279_v0 = vadd.f32 %v2753_v21, %v1278_v4 }
 0x32d   : > { %v1334_v37 = vadd.f32 %v1318_v13, %v1284_v40 }
 0x32e   : > { %v1333_v63 = vadd.f32 %v1317_v62, %v1279_v0  ;;  %v1737_v48 = vpop.f32.mrb[44].mxu0 }
 0x32f   : > { %1350 = vst [vmem:[%s2765_s16 + $0x58] sm:$0xff] %v1334_v37  ;;  %v1294_v59 = vadd.f32 %v1737_v48, %v2753_v21  ;;  %v1288_v32 = vpop.f32.mrb[45].mxu0 }
 0x330   : > { %1349 = vst [vmem:[%s2765_s16 + $0x50] sm:$0xff] %v1333_v63  ;;  %v1289_v33 = vadd.f32 %v2753_v21, %v1288_v32 }
 0x331   : > { %v1336_v43 = vadd.f32 %v1320_v22, %v1294_v59 }
 0x332   : > { %v1335_v45 = vadd.f32 %v1319_v35, %v1289_v33  ;;  %v1740_v9 = vpop.f32.mrb[32].mxu1 }
 0x333   : > { %1352 = vst [vmem:[%s2765_s16 + $0x68] sm:$0xff] %v1336_v43  ;;  %v1304_v17 = vadd.f32 %v1740_v9, %v2753_v21  ;;  %v1298_v7 = vpop.f32.mrb[33].mxu1 }
 0x334   : > { %1351 = vst [vmem:[%s2765_s16 + $0x60] sm:$0xff] %v1335_v45  ;;  %v1299_v14 = vadd.f32 %v2753_v21, %v1298_v7 }
 0x335   : > { %v1338_v44 = vadd.f32 %v1322_v30, %v1304_v17 }
 0x336   : > { %v1337_v49 = vadd.f32 %v1321_v3, %v1299_v14 }
 0x337   : > { %1354 = vst [vmem:[%s2765_s16 + $0x78] sm:$0xff] %v1338_v44 }
 0x338   : > { %1353 = vst [vmem:[%s2765_s16 + $0x70] sm:$0xff] %v1337_v49 }
 0x339   : > { %2037 = shalt.err (!%p2034_p7)
}
 0x33a   : > { %s2038_s23 = scalar_lea.hbm %s2826_s28, 2048  ;;  %s2042_s17 = scalar_lea.hbm %s2884_s9, 4096 }
 0x33b   : > { %p2039_p8 = scmp.ne.s32.totalorder %s2826_s28, %s2038_s23  ;;  %p2043_p1 = scmp.lt.u32.totalorder %s2826_s28, %s2884_s9 }
 0x33c   : > { %p2044_p0 = scmp.lt.u32.totalorder %s2042_s17, %s2038_s23  ;;  %p2046_p6 = scmp.lt.u32.totalorder %s2038_s23, %s2826_s28 }
 0x33d   : > { %p2040_p11 = pnand %p2039_p8, %p2895_p9 }
 0x33e   : > { %p2045_p5 = por %p2044_p0, %p2043_p1 }
 0x33f   : > { %p2041_p13 = pneg %p2040_p11 }
 0x340   : > { %p2047_p10 = por %p2046_p6, %p2045_p5 }
 0x342   : > { %p2048_p12 = pnand %p2047_p10, %p2041_p13 }
 0x344   : > { %2051 = shalt.err (!%p2048_p12)
}
 0x345   : > { %s2097_s25 = smov 128   ;;  %s2098_s24 = smov 8  }
 0x346   : > { %1865 = dma.vmem_to_hbm [thread:$0]  (%p2895_p9), %s2828_s22, 2048, %s2826_s28, %s2834_s13, %s2097_s25, %s2097_s25, %s2098_s24  }
 0x347 PF: > { %p1877_p2 = scmp.ge.s32.totalorder %s2090_s12, 2  ;;  %s1384_s21 = sand.u32 1, %s2078_s30  }
 0x348   : > { %p2896_p3 = scmp.ne.s32.totalorder %s2889_s20, 0  ;;  %s1385_s29 = scalar_lea.sflag [#allocation4], %s1384_s21 }
 0x34a   : > { %p1872_p4 = pnand %p1877_p2, %p2896_p3 }
 0x34c   : > { %2073 = dma.done.wait (!%p1872_p4), %s1385_s29, 2048  }
 0x34d   : > { %2075 = vsyncadd (!%p1872_p4), %s1385_s29, 4294965248  ;;  %p20_p7 = scmp.ge.s32.totalorder %s2174_s15, 4   ;;  %s2897_s30 = smov %s2082_s10 }
 0x34e   : > { %s2898_s10 = smov %s2086_s11  ;;  %s2899_s11 = smov %s2185_s18 }
 0x34f   : > { %s2900_s12 = smov %s2174_s15  ;;  %22 = sbr.rel (!%p20_p7) target bundleno = 4 (0x4), region = 96 }
 0x356   :  { %1390 = vsyncpa [#allocation3], 1 }
 0x357   :  { %1392 = vsyncpa [#allocation3 + $0x1], 1 }
 0x358   :  { %1393 = vsyncpa [#allocation4], 1 }
 0x359   :  { %1395 = vsyncpa [#allocation4 + $0x1], 1 }

</bundles_post_ra>
